<compile_context>
chip_gen: v7x
topology: tpu7x:2x2x1
jax: 0.10.0
libtpu: 0.0.40
codegen_flags: <defaults>
</compile_context>

<pallas_src>
import jax
import jax.numpy as jnp
from jax.experimental import pallas as pl
from jax.experimental.pallas import tpu as pltpu


def _round_up(x, m):
    return (x + m - 1) // m * m


def _pad_to(x, shape):
    return jnp.pad(x, [(0, s - d) for d, s in zip(x.shape, shape)])


def dgi_forward(seq1, seq2, adj, wg, bg, alpha, wb, bb, *, tile_n=256):
    """DGI forward (critic='bilinear', sparse=False, msk=None, samp_bias*=None)."""
    B, N, F = seq1.shape
    H = wg.shape[1]
    f32 = jnp.float32
    bf16 = jnp.bfloat16

    N_pad = _round_up(max(N, tile_n), tile_n)
    H_pad = _round_up(H, 128)
    n_tiles = N_pad // tile_n

    # --- Hoisted feature transform (perf review): O(N*F*H) is tiny next to the
    #     O(N^2*H) aggregation; computed in f32, stored bf16 for the kernel.
    xw1_p = _pad_to(jnp.einsum('bnf,fh->bnh', seq1.astype(f32), wg.astype(f32)),
                    (B, N_pad, H_pad)).astype(bf16)
    xw2_p = _pad_to(jnp.einsum('bnf,fh->bnh', seq2.astype(f32), wg.astype(f32)),
                    (B, N_pad, H_pad)).astype(bf16)
    adj_p = _pad_to(adj.astype(f32), (B, N_pad, N_pad)).astype(bf16)
    bg_p = _pad_to(jnp.reshape(bg, (1, H)).astype(f32), (1, H_pad))
    wbt_p = _pad_to(wb.T.astype(f32), (H_pad, H_pad))          # Wb^T, wrapper-only
    alpha_s = jnp.asarray(alpha, dtype=f32).reshape((1,))
    bb_s = jnp.asarray(bb, dtype=f32).reshape((1,))

    # ------------------------------------------------------------------
    # Kernel 1: GCN aggregation (shared weights, adj tile reused for both
    # sequences) + per-tile masked readout partial sums.  Fully parallel grid.
    # ------------------------------------------------------------------
    def gcn_kernel(adj_ref, xw1_ref, xw2_ref, bg_ref, alpha_ref,
                   h1_ref, h2_ref, part_ref):
        t = pl.program_id(1)
        alpha_v = alpha_ref[0]
        bg_row = bg_ref[...]                                   # (1, H_pad) f32

        adj_tile = adj_ref[...]                                # (tile_n, N_pad) bf16
        a1 = jnp.dot(adj_tile, xw1_ref[...],
                     preferred_element_type=jnp.float32) + bg_row
        a2 = jnp.dot(adj_tile, xw2_ref[...],
                     preferred_element_type=jnp.float32) + bg_row
        h1 = jnp.where(a1 > 0, a1, alpha_v * a1)               # PReLU, f32
        h2 = jnp.where(a2 > 0, a2, alpha_v * a2)
        h1_ref[...] = h1.astype(h1_ref.dtype)                  # bf16 writeback
        h2_ref[...] = h2.astype(h2_ref.dtype)

        # Masked partial readout sum over valid node rows (f32, pre-cast).
        # Padded node rows carry PReLU(bg) != 0 so they must be excluded;
        # the mask is skipped entirely when N is already tile-aligned.
        if N == N_pad:
            psum = jnp.sum(h1, axis=0, keepdims=True)          # (1, H_pad)
        else:
            row = (jax.lax.broadcasted_iota(jnp.int32, (tile_n, 1), 0)
                   + t * tile_n)
            psum = jnp.sum(jnp.where(row < N, h1, 0.0), axis=0, keepdims=True)
        # Store psum/8 broadcast over 8 sublanes: keeps the output block
        # (8, 128)-aligned and the node-tile axis fully parallel; the wrapper
        # simply sums axis 1 to recover the exact f32 readout sum.
        part_ref[...] = jnp.broadcast_to(psum * 0.125, (8, H_pad))

    h1_p, h2_p, parts = pl.pallas_call(
        gcn_kernel,
        out_shape=(
            jax.ShapeDtypeStruct((B, N_pad, H_pad), bf16),
            jax.ShapeDtypeStruct((B, N_pad, H_pad), bf16),
            jax.ShapeDtypeStruct((B, 8 * n_tiles, H_pad), f32),
        ),
        grid=(B, n_tiles),
        in_specs=[
            pl.BlockSpec((None, tile_n, N_pad), lambda b, t: (b, t, 0)),   # adj rows
            pl.BlockSpec((None, N_pad, H_pad), lambda b, t: (b, 0, 0)),    # xw1
            pl.BlockSpec((None, N_pad, H_pad), lambda b, t: (b, 0, 0)),    # xw2
            pl.BlockSpec((1, H_pad), lambda b, t: (0, 0)),                 # bg
            pl.BlockSpec(memory_space=pltpu.SMEM),                         # alpha
        ],
        out_specs=(
            pl.BlockSpec((None, tile_n, H_pad), lambda b, t: (b, t, 0)),   # h1
            pl.BlockSpec((None, tile_n, H_pad), lambda b, t: (b, t, 0)),   # h2
            pl.BlockSpec((None, 8, H_pad), lambda b, t: (b, t, 0)),        # partials
        ),
        compiler_params=pltpu.CompilerParams(
            dimension_semantics=("parallel", "parallel"),
            vmem_limit_bytes=40 * 1024 * 1024),
        # TODO(synk): for very large graphs on v7x, add a K-tile grid axis over
        # the adj contraction dim so xw is streamed instead of fully resident.
    )(adj_p, xw1_p, xw2_p, bg_p, alpha_s)

    # --- Readout finalize + bilinear left-factor (tiny XLA ops).
    acc = jnp.sum(parts, axis=1)                          # (B, H_pad) exact f32 sum
    c = jax.nn.sigmoid(acc * (1.0 / float(N)))            # mean over REAL nodes
    # Padded columns of c are sigmoid(0)=0.5 but hit zero rows of Wb^T.
    wc_p = (c @ wbt_p).astype(bf16).reshape(B, 1, H_pad)  # (B, 1, H_pad)

    # ------------------------------------------------------------------
    # Kernel 2: bilinear critic, HBM-streaming bound -> large lane-dense tiles.
    # ------------------------------------------------------------------
    tile_m = tile_n
    for cand in (2048, 1024, 512):
        if N_pad % cand == 0 and 4 * cand * H_pad * 2 <= 16 * 1024 * 1024:
            tile_m = cand
            break
    m_tiles = N_pad // tile_m

    def critic_kernel(h1_ref, h2_ref, wc_ref, bb_ref, out_ref):
        wc_row = wc_ref[...]                                     # (1, H_pad) bf16
        bb_v = bb_ref[0]
        sc1 = jnp.einsum('kh,nh->kn', wc_row, h1_ref[...],
                         preferred_element_type=jnp.float32)     # (1, tile_m)
        sc2 = jnp.einsum('kh,nh->kn', wc_row, h2_ref[...],
                         preferred_element_type=jnp.float32)
        out_ref[0:1, :] = sc1 + bb_v
        out_ref[1:2, :] = sc2 + bb_v
        # TODO(synk): samp_bias1 / samp_bias2 are None in the reference call
        # path; non-None biases would simply be added to sc1 / sc2 here.

    scores_p = pl.pallas_call(
        critic_kernel,
        out_shape=jax.ShapeDtypeStruct((B, 2, N_pad), f32),
        grid=(B, m_tiles),
        in_specs=[
            pl.BlockSpec((None, tile_m, H_pad), lambda b, t: (b, t, 0)),   # h1
            pl.BlockSpec((None, tile_m, H_pad), lambda b, t: (b, t, 0)),   # h2
            pl.BlockSpec((None, 1, H_pad), lambda b, t: (b, 0, 0)),        # wc
            pl.BlockSpec(memory_space=pltpu.SMEM),                         # bb
        ],
        out_specs=pl.BlockSpec((None, 2, tile_m), lambda b, t: (b, 0, t)),
        compiler_params=pltpu.CompilerParams(
            dimension_semantics=("parallel", "parallel"),
            vmem_limit_bytes=40 * 1024 * 1024),
    )(h1_p, h2_p, wc_p, bb_s)

    # logits = cat([sc1, sc2], dim=1): drop node padding; row-major flatten
    # keeps [sc1(0..N-1), sc2(0..N-1)] order per batch row.
    return scores_p[:, :, :N].reshape(B, 2 * N)
    # TODO(synk): sparse=True (torch.spmm) path and msk-weighted readout are
    # not implemented; the reference call path uses sparse=False, msk=None.


if __name__ == "__main__":
    # Small, DGI-consistent shapes: batch=2 graphs, 8 nodes, 16 input feats,
    # 32 hidden units (padded to lane-friendly shapes inside the wrapper).
    B, N, F, H = 2, 8, 16, 32
    key = jax.random.PRNGKey(0)
    k1, k2, k3, k4, k5 = jax.random.split(key, 5)

    seq1 = jax.random.normal(k1, (B, N, F), dtype=jnp.float32)
    seq2 = jax.random.normal(k2, (B, N, F), dtype=jnp.float32)
    # Row-normalized dense adjacency with self loops (typical DGI preprocessing).
    a = (jax.random.uniform(k3, (B, N, N)) > 0.5).astype(jnp.float32)
    a = a + jnp.eye(N, dtype=jnp.float32)[None]
    adj = a / jnp.sum(a, axis=-1, keepdims=True)

    # GCN: Linear(F, H, bias=False) weight + separate zero bias; PReLU(0.25).
    # Discriminator: nn.Bilinear(H, H, 1) -> weight (H, H), scalar bias.
    wg = jax.random.normal(k4, (F, H), dtype=jnp.float32) * (1.0 / jnp.sqrt(F))
    bg = jnp.zeros((1, H), dtype=jnp.float32)
    alpha = jnp.float32(0.25)
    wb = jax.random.normal(k5, (H, H), dtype=jnp.float32) * (1.0 / jnp.sqrt(H))
    bb = jnp.float32(0.0)

    logits = jax.jit(dgi_forward)(seq1, seq2, adj, wg, bg, alpha, wb, bb)
    jax.block_until_ready(logits)
    assert logits.shape == (B, 2 * N), logits.shape

    # Pure-JAX f32 reference of the same math.
    def ref(seq1, seq2, adj, wg, bg, alpha, wb, bb):
        def gcn(s):
            o = jnp.einsum('bnm,bmh->bnh', adj, s @ wg) + bg.reshape(1, 1, -1)
            return jnp.where(o > 0, o, alpha * o)
        h1, h2 = gcn(seq1), gcn(seq2)
        c = jax.nn.sigmoid(jnp.mean(h1, axis=1))
        wc = c @ wb.T
        sc1 = jnp.sum(h1 * wc[:, None, :], -1) + bb
        sc2 = jnp.sum(h2 * wc[:, None, :], -1) + bb
        return jnp.concatenate([sc1, sc2], axis=1)

    expected = ref(seq1, seq2, adj, wg, bg, alpha, wb, bb)
    err = float(jnp.max(jnp.abs(logits - expected)))
    # Relaxed tolerance: adj/xw/h1/h2/wc are bf16 (f32 MXU accumulation), so
    # scores match the f32 reference to ~1% of their magnitude.
    assert jnp.allclose(logits, expected, atol=1e-1, rtol=1e-1), err
    print("KERNEL_OK")
</pallas_src>

<mosaic_0001>
module attributes {stable_mosaic.version = 11 : i64} {
  func.func @gcn_kernel(%arg0: i32, %arg1: i32, %arg2: memref<1x256x256xbf16, #tpu.memory_space<vmem>>, %arg3: memref<1x256x128xbf16, #tpu.memory_space<vmem>>, %arg4: memref<1x256x128xbf16, #tpu.memory_space<vmem>>, %arg5: memref<1x128xf32, #tpu.memory_space<vmem>>, %arg6: memref<1xf32, #tpu.memory_space<smem>>, %arg7: memref<1x256x128xbf16, #tpu.memory_space<vmem>>, %arg8: memref<1x256x128xbf16, #tpu.memory_space<vmem>>, %arg9: memref<1x8x128xf32, #tpu.memory_space<vmem>>) attributes {dimension_semantics = [#tpu.dimension_semantics<parallel>, #tpu.dimension_semantics<parallel>], iteration_bounds = array<i64: 2, 1>, scalar_prefetch = 0 : i64, scratch_operands = 0 : i64, tpu.core_type = #tpu.core_type<tc>, window_params = [{transform_indices = @transform_0, window_bounds = array<i64: 1, 256, 256>}, {transform_indices = @transform_1, window_bounds = array<i64: 1, 256, 128>}, {transform_indices = @transform_2, window_bounds = array<i64: 1, 256, 128>}, {pipeline_mode = #tpu.pipeline_mode<synchronous>, transform_indices = @transform_3, window_bounds = array<i64: 1, 128>}, {transform_indices = @transform_4, window_bounds = array<i64: 1>}, {transform_indices = @transform_5, window_bounds = array<i64: 1, 256, 128>}, {transform_indices = @transform_6, window_bounds = array<i64: 1, 256, 128>}, {transform_indices = @transform_7, window_bounds = array<i64: 1, 8, 128>}]} {
    %c0 = arith.constant 0 : index
    %0 = memref.load %arg6[%c0] : memref<1xf32, #tpu.memory_space<smem>>
    %c0_0 = arith.constant 0 : index
    %c0_1 = arith.constant 0 : index
    %1 = vector.load %arg5[%c0_0, %c0_1] : memref<1x128xf32, #tpu.memory_space<vmem>>, vector<1x128xf32>
    %c0_2 = arith.constant 0 : index
    %c0_3 = arith.constant 0 : index
    %c0_4 = arith.constant 0 : index
    %2 = vector.load %arg2[%c0_2, %c0_3, %c0_4] : memref<1x256x256xbf16, #tpu.memory_space<vmem>>, vector<1x256x256xbf16>
    %3 = vector.shape_cast %2 : vector<1x256x256xbf16> to vector<256x256xbf16>
    %c0_5 = arith.constant 0 : index
    %c0_6 = arith.constant 0 : index
    %c0_7 = arith.constant 0 : index
    %4 = vector.load %arg3[%c0_5, %c0_6, %c0_7] : memref<1x256x128xbf16, #tpu.memory_space<vmem>>, vector<1x256x128xbf16>
    %5 = vector.shape_cast %4 : vector<1x256x128xbf16> to vector<256x128xbf16>
    %cst = arith.constant dense<0.000000e+00> : vector<256x128xf32>
    %6 = tpu.matmul %3, %5, %cst {dimension_numbers = #tpu.dot_dimension_numbers<[1], [0], [0], [1], [0, 0, 1, 1], [], []>} : vector<256x256xbf16>, vector<256x128xbf16>, vector<256x128xf32> -> vector<256x128xf32>
    %7 = vector.broadcast %1 : vector<1x128xf32> to vector<256x128xf32>
    %8 = arith.addf %6, %7 : vector<256x128xf32>
    %c0_8 = arith.constant 0 : index
    %c0_9 = arith.constant 0 : index
    %c0_10 = arith.constant 0 : index
    %9 = vector.load %arg4[%c0_8, %c0_9, %c0_10] : memref<1x256x128xbf16, #tpu.memory_space<vmem>>, vector<1x256x128xbf16>
    %10 = vector.shape_cast %9 : vector<1x256x128xbf16> to vector<256x128xbf16>
    %cst_11 = arith.constant dense<0.000000e+00> : vector<256x128xf32>
    %11 = tpu.matmul %3, %10, %cst_11 {dimension_numbers = #tpu.dot_dimension_numbers<[1], [0], [0], [1], [0, 0, 1, 1], [], []>} : vector<256x256xbf16>, vector<256x128xbf16>, vector<256x128xf32> -> vector<256x128xf32>
    %12 = vector.broadcast %1 : vector<1x128xf32> to vector<256x128xf32>
    %13 = arith.addf %11, %12 : vector<256x128xf32>
    %cst_12 = arith.constant 0.000000e+00 : f32
    %14 = vector.broadcast %cst_12 : f32 to vector<256x128xf32>
    %15 = arith.cmpf ogt, %8, %14 : vector<256x128xf32>
    %16 = vector.broadcast %0 : f32 to vector<256x128xf32>
    %17 = arith.mulf %16, %8 : vector<256x128xf32>
    %18 = arith.select %15, %8, %17 : vector<256x128xi1>, vector<256x128xf32>
    %cst_13 = arith.constant 0.000000e+00 : f32
    %19 = vector.broadcast %cst_13 : f32 to vector<256x128xf32>
    %20 = arith.cmpf ogt, %13, %19 : vector<256x128xf32>
    %21 = vector.broadcast %0 : f32 to vector<256x128xf32>
    %22 = arith.mulf %21, %13 : vector<256x128xf32>
    %23 = arith.select %20, %13, %22 : vector<256x128xi1>, vector<256x128xf32>
    %24 = arith.truncf %18 : vector<256x128xf32> to vector<256x128xbf16>
    %c0_14 = arith.constant 0 : index
    %c0_15 = arith.constant 0 : index
    %c0_16 = arith.constant 0 : index
    %25 = vector.load %arg7[%c0_14, %c0_15, %c0_16] : memref<1x256x128xbf16, #tpu.memory_space<vmem>>, vector<1x256x128xbf16>
    %26 = vector.shape_cast %25 : vector<1x256x128xbf16> to vector<256x128xbf16>
    %27 = vector.shape_cast %24 : vector<256x128xbf16> to vector<1x256x128xbf16>
    tpu.vector_store %arg7[%c0_14, %c0_15, %c0_16], %27 {strides = array<i32>} : memref<1x256x128xbf16, #tpu.memory_space<vmem>>, vector<1x256x128xbf16>,
    %28 = arith.truncf %23 : vector<256x128xf32> to vector<256x128xbf16>
    %c0_17 = arith.constant 0 : index
    %c0_18 = arith.constant 0 : index
    %c0_19 = arith.constant 0 : index
    %29 = vector.load %arg8[%c0_17, %c0_18, %c0_19] : memref<1x256x128xbf16, #tpu.memory_space<vmem>>, vector<1x256x128xbf16>
    %30 = vector.shape_cast %29 : vector<1x256x128xbf16> to vector<256x128xbf16>
    %31 = vector.shape_cast %28 : vector<256x128xbf16> to vector<1x256x128xbf16>
    tpu.vector_store %arg8[%c0_17, %c0_18, %c0_19], %31 {strides = array<i32>} : memref<1x256x128xbf16, #tpu.memory_space<vmem>>, vector<1x256x128xbf16>,
    %32 = tpu.iota {dimensions = array<i32: 0>} : vector<256x1xi32>
    %c256_i32 = arith.constant 256 : i32
    %33 = arith.muli %arg1, %c256_i32 : i32
    %34 = vector.broadcast %33 : i32 to vector<256x1xi32>
    %35 = arith.addi %32, %34 : vector<256x1xi32>
    %c8_i32 = arith.constant 8 : i32
    %36 = vector.broadcast %c8_i32 : i32 to vector<256x1xi32>
    %37 = arith.cmpi slt, %35, %36 : vector<256x1xi32>
    %cst_20 = arith.constant 0.000000e+00 : f32
    %38 = vector.shape_cast %37 : vector<256x1xi1> to vector<256x1xi1>
    %39 = vector.broadcast %38 : vector<256x1xi1> to vector<256x128xi1>
    %40 = vector.broadcast %cst_20 : f32 to vector<256x128xf32>
    %41 = arith.select %39, %18, %40 : vector<256x128xi1>, vector<256x128xf32>
    %cst_21 = arith.constant dense<0.000000e+00> : vector<128xf32>
    %42 = vector.multi_reduction <add>, %41, %cst_21 [0] : vector<256x128xf32> to vector<128xf32>
    %43 = vector.shape_cast %42 : vector<128xf32> to vector<1x128xf32>
    %cst_22 = arith.constant 1.250000e-01 : f32
    %44 = vector.broadcast %cst_22 : f32 to vector<1x128xf32>
    %45 = arith.mulf %43, %44 : vector<1x128xf32>
    %46 = vector.shape_cast %45 : vector<1x128xf32> to vector<1x128xf32>
    %47 = vector.broadcast %46 : vector<1x128xf32> to vector<8x128xf32>
    %c0_23 = arith.constant 0 : index
    %c0_24 = arith.constant 0 : index
    %c0_25 = arith.constant 0 : index
    %48 = vector.load %arg9[%c0_23, %c0_24, %c0_25] : memref<1x8x128xf32, #tpu.memory_space<vmem>>, vector<1x8x128xf32>
    %49 = vector.shape_cast %48 : vector<1x8x128xf32> to vector<8x128xf32>
    %50 = vector.shape_cast %47 : vector<8x128xf32> to vector<1x8x128xf32>
    tpu.vector_store %arg9[%c0_23, %c0_24, %c0_25], %50 {strides = array<i32>} : memref<1x8x128xf32, #tpu.memory_space<vmem>>, vector<1x8x128xf32>,
    return
  }
  func.func @transform_0(%arg0: i32, %arg1: i32) -> (i32, i32, i32) {
    %c0_i32 = arith.constant 0 : i32
    %c0_i32_0 = arith.constant 0 : i32
    return %arg0, %arg1, %c0_i32 : i32, i32, i32
  }
  func.func @transform_1(%arg0: i32, %arg1: i32) -> (i32, i32, i32) {
    %c0_i32 = arith.constant 0 : i32
    %c0_i32_0 = arith.constant 0 : i32
    %c0_i32_1 = arith.constant 0 : i32
    return %arg0, %c0_i32, %c0_i32_0 : i32, i32, i32
  }
  func.func @transform_2(%arg0: i32, %arg1: i32) -> (i32, i32, i32) {
    %c0_i32 = arith.constant 0 : i32
    %c0_i32_0 = arith.constant 0 : i32
    %c0_i32_1 = arith.constant 0 : i32
    return %arg0, %c0_i32, %c0_i32_0 : i32, i32, i32
  }
  func.func @transform_3(%arg0: i32, %arg1: i32) -> (i32, i32) {
    %c0_i32 = arith.constant 0 : i32
    %c0_i32_0 = arith.constant 0 : i32
    %c0_i32_1 = arith.constant 0 : i32
    return %c0_i32, %c0_i32_0 : i32, i32
  }
  func.func @transform_4(%arg0: i32, %arg1: i32) -> i32 {
    %c0_i32 = arith.constant 0 : i32
    %c0_i32_0 = arith.constant 0 : i32
    return %c0_i32 : i32
  }
  func.func @transform_5(%arg0: i32, %arg1: i32) -> (i32, i32, i32) {
    %c0_i32 = arith.constant 0 : i32
    %c0_i32_0 = arith.constant 0 : i32
    return %arg0, %arg1, %c0_i32 : i32, i32, i32
  }
  func.func @transform_6(%arg0: i32, %arg1: i32) -> (i32, i32, i32) {
    %c0_i32 = arith.constant 0 : i32
    %c0_i32_0 = arith.constant 0 : i32
    return %arg0, %arg1, %c0_i32 : i32, i32, i32
  }
  func.func @transform_7(%arg0: i32, %arg1: i32) -> (i32, i32, i32) {
    %c0_i32 = arith.constant 0 : i32
    %c0_i32_0 = arith.constant 0 : i32
    return %arg0, %arg1, %c0_i32 : i32, i32, i32
  }
}

module attributes {stable_mosaic.version = 11 : i64} {
  func.func @critic_kernel(%arg0: i32, %arg1: i32, %arg2: memref<1x256x128xbf16, #tpu.memory_space<vmem>>, %arg3: memref<1x256x128xbf16, #tpu.memory_space<vmem>>, %arg4: memref<1x1x128xbf16, #tpu.memory_space<vmem>>, %arg5: memref<1xf32, #tpu.memory_space<smem>>, %arg6: memref<1x2x256xf32, #tpu.memory_space<vmem>>) attributes {dimension_semantics = [#tpu.dimension_semantics<parallel>, #tpu.dimension_semantics<parallel>], iteration_bounds = array<i64: 2, 1>, scalar_prefetch = 0 : i64, scratch_operands = 0 : i64, tpu.core_type = #tpu.core_type<tc>, window_params = [{transform_indices = @transform_0, window_bounds = array<i64: 1, 256, 128>}, {transform_indices = @transform_1, window_bounds = array<i64: 1, 256, 128>}, {transform_indices = @transform_2, window_bounds = array<i64: 1, 1, 128>}, {transform_indices = @transform_3, window_bounds = array<i64: 1>}, {transform_indices = @transform_4, window_bounds = array<i64: 1, 2, 256>}]} {
    %c0 = arith.constant 0 : index
    %c0_0 = arith.constant 0 : index
    %c0_1 = arith.constant 0 : index
    %0 = vector.load %arg4[%c0, %c0_0, %c0_1] : memref<1x1x128xbf16, #tpu.memory_space<vmem>>, vector<1x1x128xbf16>
    %1 = vector.shape_cast %0 : vector<1x1x128xbf16> to vector<1x128xbf16>
    %c0_2 = arith.constant 0 : index
    %2 = memref.load %arg5[%c0_2] : memref<1xf32, #tpu.memory_space<smem>>
    %c0_3 = arith.constant 0 : index
    %c0_4 = arith.constant 0 : index
    %c0_5 = arith.constant 0 : index
    %3 = vector.load %arg2[%c0_3, %c0_4, %c0_5] : memref<1x256x128xbf16, #tpu.memory_space<vmem>>, vector<1x256x128xbf16>
    %4 = vector.shape_cast %3 : vector<1x256x128xbf16> to vector<256x128xbf16>
    "tpu.trace_start"() <{level = 10 : i32, message = "kh,nh->kn"}> : () -> ()
    %cst = arith.constant dense<0.000000e+00> : vector<1x256xf32>
    %5 = tpu.matmul %1, %4, %cst {dimension_numbers = #tpu.dot_dimension_numbers<[1], [1], [0], [0], [0, 0, 1, 0], [], []>} : vector<1x128xbf16>, vector<256x128xbf16>, vector<1x256xf32> -> vector<1x256xf32>
    "tpu.trace_stop"() : () -> ()
    %c0_6 = arith.constant 0 : index
    %c0_7 = arith.constant 0 : index
    %c0_8 = arith.constant 0 : index
    %6 = vector.load %arg3[%c0_6, %c0_7, %c0_8] : memref<1x256x128xbf16, #tpu.memory_space<vmem>>, vector<1x256x128xbf16>
    %7 = vector.shape_cast %6 : vector<1x256x128xbf16> to vector<256x128xbf16>
    "tpu.trace_start"() <{level = 10 : i32, message = "kh,nh->kn"}> : () -> ()
    %cst_9 = arith.constant dense<0.000000e+00> : vector<1x256xf32>
    %8 = tpu.matmul %1, %7, %cst_9 {dimension_numbers = #tpu.dot_dimension_numbers<[1], [1], [0], [0], [0, 0, 1, 0], [], []>} : vector<1x128xbf16>, vector<256x128xbf16>, vector<1x256xf32> -> vector<1x256xf32>
    "tpu.trace_stop"() : () -> ()
    %9 = vector.broadcast %2 : f32 to vector<1x256xf32>
    %10 = arith.addf %5, %9 : vector<1x256xf32>
    %c0_10 = arith.constant 0 : index
    %c0_11 = arith.constant 0 : index
    %c0_12 = arith.constant 0 : index
    %11 = vector.load %arg6[%c0_10, %c0_11, %c0_12] : memref<1x2x256xf32, #tpu.memory_space<vmem>>, vector<1x1x256xf32>
    %12 = vector.shape_cast %11 : vector<1x1x256xf32> to vector<1x256xf32>
    %13 = vector.shape_cast %10 : vector<1x256xf32> to vector<1x1x256xf32>
    tpu.vector_store %arg6[%c0_10, %c0_11, %c0_12], %13 {strides = array<i32>} : memref<1x2x256xf32, #tpu.memory_space<vmem>>, vector<1x1x256xf32>,
    %14 = vector.broadcast %2 : f32 to vector<1x256xf32>
    %15 = arith.addf %8, %14 : vector<1x256xf32>
    %c0_13 = arith.constant 0 : index
    %c1 = arith.constant 1 : index
    %c0_14 = arith.constant 0 : index
    %16 = vector.load %arg6[%c0_13, %c1, %c0_14] : memref<1x2x256xf32, #tpu.memory_space<vmem>>, vector<1x1x256xf32>
    %17 = vector.shape_cast %16 : vector<1x1x256xf32> to vector<1x256xf32>
    %18 = vector.shape_cast %15 : vector<1x256xf32> to vector<1x1x256xf32>
    tpu.vector_store %arg6[%c0_13, %c1, %c0_14], %18 {strides = array<i32>} : memref<1x2x256xf32, #tpu.memory_space<vmem>>, vector<1x1x256xf32>,
    return
  }
  func.func @transform_0(%arg0: i32, %arg1: i32) -> (i32, i32, i32) {
    %c0_i32 = arith.constant 0 : i32
    %c0_i32_0 = arith.constant 0 : i32
    return %arg0, %arg1, %c0_i32 : i32, i32, i32
  }
  func.func @transform_1(%arg0: i32, %arg1: i32) -> (i32, i32, i32) {
    %c0_i32 = arith.constant 0 : i32
    %c0_i32_0 = arith.constant 0 : i32
    return %arg0, %arg1, %c0_i32 : i32, i32, i32
  }
  func.func @transform_2(%arg0: i32, %arg1: i32) -> (i32, i32, i32) {
    %c0_i32 = arith.constant 0 : i32
    %c0_i32_0 = arith.constant 0 : i32
    %c0_i32_1 = arith.constant 0 : i32
    return %arg0, %c0_i32, %c0_i32_0 : i32, i32, i32
  }
  func.func @transform_3(%arg0: i32, %arg1: i32) -> i32 {
    %c0_i32 = arith.constant 0 : i32
    %c0_i32_0 = arith.constant 0 : i32
    return %c0_i32 : i32
  }
  func.func @transform_4(%arg0: i32, %arg1: i32) -> (i32, i32, i32) {
    %c0_i32 = arith.constant 0 : i32
    %c0_i32_0 = arith.constant 0 : i32
    return %arg0, %c0_i32, %arg1 : i32, i32, i32
  }
}

</mosaic_0001>

<bundles_post_ra>
// kernel: dgi_forward.3
= control target key start
LH: loop header
LB: loop body
LE: loop exit
PB: predicated region body
PF: predicated region fallthrough
CT: control target
= control target key end

     0   :  { %s982_s17 = smov 0   ;;  %s984_s18 = smov 0   ;;  %s1068_s0 = inlined_call_operand.vmem [shape: bf16[2,256,128], index: 0, kind: input, shape index: {}]   ;;  %s1069_s1 = inlined_call_operand.vmem [shape: bf16[2,256,128], index: 1, kind: input, shape index: {}]   ;;  %s1070_s2 = inlined_call_operand.vmem [shape: bf16[2,1,128], index: 2, kind: input, shape index: {}]   ;;  %s1071_s3 = inlined_call_operand.<no memory space> [shape: f32[1], index: 3, kind: input, shape index: {}]   ;;  %s1072_s4 = inlined_call_operand.vmem [shape: f32[2,2,256], index: 4, kind: output, shape index: {}]  }
   0x1   :  { %9 = sst [smem:[#allocation2]] %s1071_s3  ;;  %s986_s19 = smov 0  }
   0x2 LB: > { %s27_s3 = sadd.s32 1, %s947_s18  ;;  %p791_p0 = scmp.ge.s32.totalorder %s951_s19, 1  ;;  %s951_s19 = sphi %s986_s19, %s15_s19   ;;  %s947_s18 = sphi %s984_s18, %s1074_s18   ;;  %s943_s17 = sphi %s982_s17, %s1073_s17  }
   0x3   : > { %p29_p1 = scmp.ge.s32.totalorder %s27_s3, 2  ;;  %p209_p2 = scmp.lt.s32.totalorder %s951_s19, 3 }
   0x5   : > { %s1076_s3 = smov (%p29_p1, %s27_s3), 0  ;;  %p210_p3 = pnand %p791_p0, %p209_p2 }
   0x6   : > { %p256_p4 = scmp.lt.s32.totalorder (!%p210_p3), %s943_s17, 1  ;;  %s290_s30 = sld [smem:[#allocation2]] (!%p210_p3)  ;;  %v953_v33 = vmov (!%p210_p3), 1966171168   ;;  %v499_v35 = vlaneseq (!%p210_p3) }
   0x7   : > { %213 = sbr.rel (%p210_p3) target bundleno = 306 (0x132), region = 36  ;;  %v497_v34 = vunpack.c.l.s4 (!%p210_p3), %v953_v33 }
   0x8   : > { %v500_v38 = vshrl.u32 (!%p210_p3), %v499_v35, 7  ;;  %vm513_vm0 = vcmp.lt.s32.totalorder (!%p210_p3), %v499_v35, 256 }
   0x9   : > { %v498_v37 = vunpack.c.0.s8 (!%p210_p3), %v497_v34 }
   0xb   : > { %v501_v45 = vsub.s32 (!%p210_p3), %v498_v37, %v500_v38 }
   0xc   : > { %v355_v36 = vstv (!%p210_p3), %s290_s30 }
   0xe   : > { %s1078_s17 = smov (!%p256_p4, %s943_s17), 1 }
   0xf   : > { %s833_s20 = sshll.u32 %s1078_s17, 7  ;;  %s277_s23 = scalar_lea.vmem %s1070_s2, %s1078_s17 }
  0x10   : > { %s1010_s26 = scalar_lea.vmem %s1068_s0, %s833_s20  ;;  %s1015_s29 = scalar_lea.vmem %s1069_s1, %s833_s20  ;;  %v1017_v0 = vld [vmem:[%s277_s23] sm:$0x1] }
  0x11   : > { %v897_v1 = vld [vmem:[%s1010_s26 + $0x40] sm:$0xff]   ;;  %852 = vmatprep.mubr.bf16.mxu0 %v1017_v0  ;;  %870 = vmatprep.mubr.bf16.mxu1 %v1017_v0  ;;  %v901_v5 = vld [vmem:[%s1010_s26 + $0x48] sm:$0xff]   ;;  %v905_v9 = vld [vmem:[%s1010_s26 + $0x50] sm:$0xff]   ;;  %s835_s5 = sshll.u32 %s1078_s17, 2 }
  0x12   : > { %v898_v2 = vld [vmem:[%s1015_s29 + $0x40] sm:$0xff]   ;;  %836 = vmatprep.subr.bf16.mxu0 %v897_v1  ;;  %v902_v6 = vld [vmem:[%s1015_s29 + $0x48] sm:$0xff]   ;;  %v906_v10 = vld [vmem:[%s1015_s29 + $0x50] sm:$0xff]   ;;  %s286_s8 = scalar_lea.vmem %s1072_s4, %s835_s5 }
  0x13   : > { %v899_v3 = vld [vmem:[%s1010_s26] sm:$0xff]   ;;  %854 = vmatprep.subr.bf16.mxu1 %v898_v2  ;;  %v903_v7 = vld [vmem:[%s1010_s26 + $0x8] sm:$0xff]   ;;  %v907_v11 = vld [vmem:[%s1010_s26 + $0x10] sm:$0xff]  }
  0x14   : > { %v900_v4 = vld [vmem:[%s1015_s29] sm:$0xff]   ;;  %837 = vmatpush3.bf16.xpose.msra.mxu0 %v899_v3  ;;  %v904_v8 = vld [vmem:[%s1015_s29 + $0x8] sm:$0xff]   ;;  %v908_v12 = vld [vmem:[%s1015_s29 + $0x10] sm:$0xff]  }
  0x15   : > { %855 = vmatpush3.bf16.xpose.msra.mxu1 %v900_v4  ;;  %838 = vmatprep.subr.bf16.mxu0 %v901_v5  ;;  %v909_v13 = vld [vmem:[%s1010_s26 + $0x58] sm:$0xff]   ;;  %v913_v17 = vld [vmem:[%s1010_s26 + $0x60] sm:$0xff]   ;;  %v917_v21 = vld [vmem:[%s1010_s26 + $0x68] sm:$0xff]  }
  0x16   : > { %856 = vmatprep.subr.bf16.mxu1 %v902_v6  ;;  %v910_v14 = vld [vmem:[%s1015_s29 + $0x58] sm:$0xff]   ;;  %v914_v18 = vld [vmem:[%s1015_s29 + $0x60] sm:$0xff]   ;;  %v918_v22 = vld [vmem:[%s1015_s29 + $0x68] sm:$0xff]  }
  0x17   : > { %v911_v15 = vld [vmem:[%s1010_s26 + $0x18] sm:$0xff]   ;;  %v915_v19 = vld [vmem:[%s1010_s26 + $0x20] sm:$0xff]   ;;  %v919_v23 = vld [vmem:[%s1010_s26 + $0x28] sm:$0xff]  }
  0x18   : > { %v912_v16 = vld [vmem:[%s1015_s29 + $0x18] sm:$0xff]   ;;  %v916_v20 = vld [vmem:[%s1015_s29 + $0x20] sm:$0xff]   ;;  %v920_v24 = vld [vmem:[%s1015_s29 + $0x28] sm:$0xff]  }
  0x19   : > { %v921_v25 = vld [vmem:[%s1010_s26 + $0x70] sm:$0xff]   ;;  %v925_v29 = vld [vmem:[%s1010_s26 + $0x78] sm:$0xff]  }
  0x1a   : > { %v922_v26 = vld [vmem:[%s1015_s29 + $0x70] sm:$0xff]   ;;  %v926_v30 = vld [vmem:[%s1015_s29 + $0x78] sm:$0xff]  }
  0x1b   : > { %v923_v27 = vld [vmem:[%s1010_s26 + $0x30] sm:$0xff]   ;;  %v927_v31 = vld [vmem:[%s1010_s26 + $0x38] sm:$0xff]  }
  0x1c   : > { %839 = vmatpush3.bf16.xpose.msra.mxu0 %v903_v7  ;;  %v924_v28 = vld [vmem:[%s1015_s29 + $0x30] sm:$0xff]   ;;  %v928_v32 = vld [vmem:[%s1015_s29 + $0x38] sm:$0xff]  }
  0x1d   : > { %857 = vmatpush3.bf16.xpose.msra.mxu1 %v904_v8  ;;  %840 = vmatprep.subr.bf16.mxu0 %v905_v9 }
  0x1e   : > { %858 = vmatprep.subr.bf16.mxu1 %v906_v10 }
  0x24   : > { %841 = vmatpush3.bf16.xpose.msra.mxu0 %v907_v11 }
  0x25   : > { %859 = vmatpush3.bf16.xpose.msra.mxu1 %v908_v12  ;;  %842 = vmatprep.subr.bf16.mxu0 %v909_v13 }
  0x26   : > { %860 = vmatprep.subr.bf16.mxu1 %v910_v14 }
  0x2c   : > { %843 = vmatpush3.bf16.xpose.msra.mxu0 %v911_v15 }
  0x2d   : > { %861 = vmatpush3.bf16.xpose.msra.mxu1 %v912_v16  ;;  %844 = vmatprep.subr.bf16.mxu0 %v913_v17 }
  0x2e   : > { %862 = vmatprep.subr.bf16.mxu1 %v914_v18 }
  0x34   : > { %845 = vmatpush3.bf16.xpose.msra.mxu0 %v915_v19 }
  0x35   : > { %863 = vmatpush3.bf16.xpose.msra.mxu1 %v916_v20  ;;  %846 = vmatprep.subr.bf16.mxu0 %v917_v21 }
  0x36   : > { %864 = vmatprep.subr.bf16.mxu1 %v918_v22 }
  0x3c   : > { %847 = vmatpush3.bf16.xpose.msra.mxu0 %v919_v23 }
  0x3d   : > { %865 = vmatpush3.bf16.xpose.msra.mxu1 %v920_v24  ;;  %848 = vmatprep.subr.bf16.mxu0 %v921_v25 }
  0x3e   : > { %866 = vmatprep.subr.bf16.mxu1 %v922_v26 }
  0x44   : > { %849 = vmatpush3.bf16.xpose.msra.mxu0 %v923_v27 }
  0x45   : > { %867 = vmatpush3.bf16.xpose.msra.mxu1 %v924_v28  ;;  %850 = vmatprep.subr.bf16.mxu0 %v925_v29 }
  0x46   : > { %868 = vmatprep.subr.bf16.mxu1 %v926_v30 }
  0x4c   : > { %851 = vmatpush3.bf16.xpose.msra.mxu0 %v927_v31 }
  0x4d   : > { %869 = vmatpush3.bf16.xpose.msra.mxu1 %v928_v32 }
  0x53   : > { %853 = vmatmul.mubr.bf16.vlgmr.msra.gmra.mrb[0].mxu0 %v1017_v0 }
  0x54   : > { %871 = vmatmul.mubr.bf16.vlgmr.msra.gmra.mrb[0].mxu1 %v1017_v0 }
 0x126   : > { %v486_v39 = vpop.f32.mrb[0].mxu0 }
 0x127   : > { %v487_v40 = vadd.f32 %v486_v39, %v355_v36  ;;  %v646_v41 = vpop.f32.mrb[0].mxu1  ;;  %v488_v42 = vpop.f32.mrb[1].mxu0 }
 0x128   : > { %v647_v43 = vadd.f32 %v646_v41, %v355_v36  ;;  %v489_v44 = vadd.f32 %v488_v42, %v355_v36  ;;  %v648_v46 = vpop.f32.mrb[1].mxu1  ;;  %v490_v47 = vpop.f32.mrb[2].mxu0 }
 0x129   : > { %v649_v48 = vadd.f32 %v648_v46, %v355_v36  ;;  %v650_v49 = vpop.f32.mrb[2].mxu1  ;;  %v491_v50 = vpop.f32.mrb[3].mxu0 }
 0x12a   : > { %v495_v51 = vcombine.low %v487_v40, %v489_v44  ;;  %v651_v52 = vpop.f32.mrb[3].mxu1 }
 0x12b   : > { %v655_v53 = vcombine.low %v647_v43, %v649_v48 }
 0x12c   : > { %v502_v54 = vrot.slane %v495_v51, %v501_v45 }
 0x12d   : > { %v662_v55 = vrot.slane %v655_v53, %v501_v45 }
 0x12e   : > { %v509_v56 = vrot.slane %v502_v54, %v501_v45 }
 0x12f   : > { %v669_v57 = vrot.slane %v662_v55, %v501_v45 }
 0x130   : > { %515 = vst.msk [vmem:[%s286_s8] ss:$2 sm:$0x3] %vm513_vm0, %v509_v56 }
 0x131   : > { %830 = vst.msk [vmem:[%s286_s8 + $0x1] ss:$2 sm:$0x3] %vm513_vm0, %v669_v57 }
 0x132 PF: > { %s15_s19 = sadd.s32 1, %s951_s19   ;;  %s1073_s17 = smov %s947_s18 }
 0x133   : > { %p12_p5 = scmp.ge.s32.totalorder %s15_s19, 4   ;;  %s1074_s18 = smov %s1076_s3 }
 0x135   :  { %14 = sbr.rel (!%p12_p5) target bundleno = 2 (0x2), region = 73 }

// kernel: dgi_forward.2
= control target key start
LH: loop header
LB: loop body
LE: loop exit
PB: predicated region body
PF: predicated region fallthrough
CT: control target
= control target key end

     0   :  { %s2936_s26 = smov 0   ;;  %s2938_s27 = smov 0   ;;  %s3237_s0 = inlined_call_operand.vmem [shape: bf16[2,256,256], index: 0, kind: input, shape index: {}]   ;;  %s3238_s1 = inlined_call_operand.vmem [shape: bf16[2,256,128], index: 1, kind: input, shape index: {}]   ;;  %s3239_s2 = inlined_call_operand.vmem [shape: bf16[2,256,128], index: 2, kind: input, shape index: {}]   ;;  %s3240_s3 = inlined_call_operand.vmem [shape: f32[1,128], index: 3, kind: input, shape index: {}]   ;;  %s3241_s4 = inlined_call_operand.<no memory space> [shape: f32[1], index: 4, kind: input, shape index: {}]   ;;  %s3242_s5 = inlined_call_operand.vmem [shape: bf16[2,256,128], index: 5, kind: output, shape index: {0}]   ;;  %s3243_s6 = inlined_call_operand.vmem [shape: bf16[2,256,128], index: 6, kind: output, shape index: {1}]   ;;  %s3244_s7 = inlined_call_operand.vmem [shape: f32[2,8,128], index: 7, kind: output, shape index: {2}]  }
   0x1   :  { %13 = sst [smem:[#allocation2]] %s3241_s4  ;;  %s2940_s28 = smov 0  }
   0x2 LB: > { %s31_s4 = sadd.s32 1, %s2887_s27  ;;  %p2139_p0 = scmp.ge.s32.totalorder %s2891_s28, 1  ;;  %s2891_s28 = sphi %s2940_s28, %s19_s28   ;;  %s2887_s27 = sphi %s2938_s27, %s3246_s27   ;;  %s2883_s26 = sphi %s2936_s26, %s3245_s26  }
   0x3   : > { %p33_p1 = scmp.ge.s32.totalorder %s31_s4, 2  ;;  %p289_p2 = scmp.lt.s32.totalorder %s2891_s28, 3 }
   0x5   : > { %s3248_s4 = smov (%p33_p1, %s31_s4), 0  ;;  %p290_p3 = pnand %p2139_p0, %p289_p2 }
   0x6   : > { %p357_p4 = scmp.lt.s32.totalorder (!%p290_p3), %s2883_s26, 1  ;;  %s405_s17 = sld [smem:[#allocation2]] (!%p290_p3) }
   0x7   : > { %293 = sbr.rel (%p290_p3) target bundleno = 397 (0x18d), region = 40 }
   0xe   : > { %s3250_s26 = smov (!%p357_p4, %s2883_s26), 1 }
   0xf   : > { %s2957_s29 = sshll.u32 %s3250_s26, 7  ;;  %s2282_s13 = sshll.u32 %s3250_s26, 8 }
  0x10   : > { %s2963_s9 = scalar_lea.vmem %s3238_s1, %s2957_s29  ;;  %s2969_s12 = scalar_lea.vmem %s3239_s2, %s2957_s29 }
  0x11   : > { %v2789_v0 = vld [vmem:[%s2963_s9 + $0x40] sm:$0xff]   ;;  %v2793_v4 = vld [vmem:[%s2963_s9 + $0x48] sm:$0xff]   ;;  %v2797_v8 = vld [vmem:[%s2963_s9 + $0x50] sm:$0xff]   ;;  %s3005_s16 = scalar_lea.vmem %s3237_s0, %s2282_s13  ;;  %s3060_s22 = scalar_lea.vmem %s3242_s5, %s2957_s29 }
  0x12   : > { %v2790_v1 = vld [vmem:[%s2969_s12 + $0x40] sm:$0xff]   ;;  %2541 = vmatprep.subr.bf16.mxu0 %v2789_v0  ;;  %v2794_v5 = vld [vmem:[%s2969_s12 + $0x48] sm:$0xff]   ;;  %v2798_v9 = vld [vmem:[%s2969_s12 + $0x50] sm:$0xff]   ;;  %s3066_s25 = scalar_lea.vmem %s3243_s6, %s2957_s29  ;;  %s2150_s29 = sshll.u32 %s3250_s26, 3 }
  0x13   : > { %v2791_v2 = vld [vmem:[%s2963_s9] sm:$0xff]   ;;  %2653 = vmatprep.subr.bf16.mxu1 %v2790_v1  ;;  %v2795_v6 = vld [vmem:[%s2963_s9 + $0x8] sm:$0xff]   ;;  %v2799_v10 = vld [vmem:[%s2963_s9 + $0x10] sm:$0xff]   ;;  %s403_s8 = scalar_lea.vmem %s3244_s7, %s2150_s29 }
  0x14   : > { %v2792_v3 = vld [vmem:[%s2969_s12] sm:$0xff]   ;;  %2542 = vmatpush3.bf16.msra.mxu0 %v2791_v2  ;;  %v2796_v7 = vld [vmem:[%s2969_s12 + $0x8] sm:$0xff]   ;;  %v2800_v11 = vld [vmem:[%s2969_s12 + $0x10] sm:$0xff]  }
  0x15   : > { %2654 = vmatpush3.bf16.msra.mxu1 %v2792_v3  ;;  %2543 = vmatprep.subr.bf16.mxu0 %v2793_v4  ;;  %v2801_v12 = vld [vmem:[%s2963_s9 + $0x58] sm:$0xff]   ;;  %v2805_v16 = vld [vmem:[%s2963_s9 + $0x60] sm:$0xff]   ;;  %v2809_v20 = vld [vmem:[%s2963_s9 + $0x68] sm:$0xff]  }
  0x16   : > { %2655 = vmatprep.subr.bf16.mxu1 %v2794_v5  ;;  %v2802_v13 = vld [vmem:[%s2969_s12 + $0x58] sm:$0xff]   ;;  %v2806_v17 = vld [vmem:[%s2969_s12 + $0x60] sm:$0xff]   ;;  %v2810_v21 = vld [vmem:[%s2969_s12 + $0x68] sm:$0xff]  }
  0x17   : > { %v2803_v14 = vld [vmem:[%s2963_s9 + $0x18] sm:$0xff]   ;;  %v2807_v18 = vld [vmem:[%s2963_s9 + $0x20] sm:$0xff]   ;;  %v2811_v22 = vld [vmem:[%s2963_s9 + $0x28] sm:$0xff]  }
  0x18   : > { %2544 = vmatpush3.bf16.msra.mxu0 %v2795_v6  ;;  %v2804_v15 = vld [vmem:[%s2969_s12 + $0x18] sm:$0xff]   ;;  %v2808_v19 = vld [vmem:[%s2969_s12 + $0x20] sm:$0xff]   ;;  %v2812_v23 = vld [vmem:[%s2969_s12 + $0x28] sm:$0xff]  }
  0x19   : > { %2656 = vmatpush3.bf16.msra.mxu1 %v2796_v7  ;;  %2545 = vmatprep.subr.bf16.mxu0 %v2797_v8  ;;  %v2813_v24 = vld [vmem:[%s2963_s9 + $0x70] sm:$0xff]   ;;  %v2817_v28 = vld [vmem:[%s2963_s9 + $0x78] sm:$0xff]   ;;  %v2821_v32 = vld [vmem:[%s3005_s16] ss:$8 sps:$4 sm:$0xff]  }
  0x1a   : > { %2657 = vmatprep.subr.bf16.mxu1 %v2798_v9  ;;  %v2814_v25 = vld [vmem:[%s2969_s12 + $0x70] sm:$0xff]   ;;  %v2818_v29 = vld [vmem:[%s2969_s12 + $0x78] sm:$0xff]   ;;  %v2823_v33 = vld [vmem:[%s3005_s16 + $0x4] ss:$8 sps:$4 sm:$0xff]   ;;  %v3046_v9 = vstv %s405_s17 }
  0x1b   : > { %v2815_v26 = vld [vmem:[%s2963_s9 + $0x30] sm:$0xff]   ;;  %v2819_v30 = vld [vmem:[%s2963_s9 + $0x38] sm:$0xff]   ;;  %765 = vmatprep.mubr.bf16.mxu0 %v2823_v33  ;;  %1054 = vmatprep.mubr.bf16.mxu1 %v2823_v33  ;;  %v2827_v36 = vld [vmem:[%s3005_s16 + $0x24] ss:$8 sps:$4 sm:$0xff]  }
  0x1c   : > { %2546 = vmatpush3.bf16.msra.mxu0 %v2799_v10  ;;  %v2816_v27 = vld [vmem:[%s2969_s12 + $0x30] sm:$0xff]   ;;  %v2820_v31 = vld [vmem:[%s2969_s12 + $0x38] sm:$0xff]   ;;  %v2829_v37 = vld [vmem:[%s3005_s16 + $0x20] ss:$8 sps:$4 sm:$0xff]  }
  0x1d   : > { %2658 = vmatpush3.bf16.msra.mxu1 %v2800_v11  ;;  %2547 = vmatprep.subr.bf16.mxu0 %v2801_v12  ;;  %v2824_v34 = vld [vmem:[%s3005_s16 + $0x14] ss:$8 sps:$4 sm:$0xff]   ;;  %v2826_v35 = vld [vmem:[%s3005_s16 + $0x10] ss:$8 sps:$4 sm:$0xff]   ;;  %v2833_v40 = vld [vmem:[%s3005_s16 + $0x44] ss:$8 sps:$4 sm:$0xff]  }
  0x1e   : > { %2659 = vmatprep.subr.bf16.mxu1 %v2802_v13  ;;  %v2830_v38 = vld [vmem:[%s3005_s16 + $0x34] ss:$8 sps:$4 sm:$0xff]   ;;  %v2832_v39 = vld [vmem:[%s3005_s16 + $0x30] ss:$8 sps:$4 sm:$0xff]   ;;  %v2835_v41 = vld [vmem:[%s3005_s16 + $0x40] ss:$8 sps:$4 sm:$0xff]  }
  0x1f   : > { %v2836_v42 = vld [vmem:[%s3005_s16 + $0x54] ss:$8 sps:$4 sm:$0xff]   ;;  %v2838_v43 = vld [vmem:[%s3005_s16 + $0x50] ss:$8 sps:$4 sm:$0xff]   ;;  %v2839_v44 = vld [vmem:[%s3005_s16 + $0x64] ss:$8 sps:$4 sm:$0xff]  }
  0x20   : > { %2548 = vmatpush3.bf16.msra.mxu0 %v2803_v14  ;;  %v2841_v45 = vld [vmem:[%s3005_s16 + $0x60] ss:$8 sps:$4 sm:$0xff]   ;;  %v2842_v46 = vld [vmem:[%s3005_s16 + $0x74] ss:$8 sps:$4 sm:$0xff]   ;;  %v2844_v47 = vld [vmem:[%s3005_s16 + $0x70] ss:$8 sps:$4 sm:$0xff]  }
  0x21   : > { %2660 = vmatpush3.bf16.msra.mxu1 %v2804_v15  ;;  %2549 = vmatprep.subr.bf16.mxu0 %v2805_v16  ;;  %v2845_v48 = vld [vmem:[%s3005_s16 + $0x84] ss:$8 sps:$4 sm:$0xff]   ;;  %v2847_v49 = vld [vmem:[%s3005_s16 + $0x80] ss:$8 sps:$4 sm:$0xff]   ;;  %v2848_v50 = vld [vmem:[%s3005_s16 + $0x94] ss:$8 sps:$4 sm:$0xff]  }
  0x22   : > { %2661 = vmatprep.subr.bf16.mxu1 %v2806_v17  ;;  %v2850_v51 = vld [vmem:[%s3005_s16 + $0x90] ss:$8 sps:$4 sm:$0xff]   ;;  %v2851_v52 = vld [vmem:[%s3005_s16 + $0xa4] ss:$8 sps:$4 sm:$0xff]   ;;  %v2853_v53 = vld [vmem:[%s3005_s16 + $0xa0] ss:$8 sps:$4 sm:$0xff]  }
  0x23   : > { %v2854_v54 = vld [vmem:[%s3005_s16 + $0xb4] ss:$8 sps:$4 sm:$0xff]   ;;  %v2856_v55 = vld [vmem:[%s3005_s16 + $0xb0] ss:$8 sps:$4 sm:$0xff]   ;;  %v2857_v56 = vld [vmem:[%s3005_s16 + $0xc4] ss:$8 sps:$4 sm:$0xff]  }
  0x24   : > { %2550 = vmatpush3.bf16.msra.mxu0 %v2807_v18  ;;  %v2859_v57 = vld [vmem:[%s3005_s16 + $0xc0] ss:$8 sps:$4 sm:$0xff]   ;;  %v2860_v58 = vld [vmem:[%s3005_s16 + $0xd4] ss:$8 sps:$4 sm:$0xff]   ;;  %v2862_v59 = vld [vmem:[%s3005_s16 + $0xd0] ss:$8 sps:$4 sm:$0xff]  }
  0x25   : > { %2662 = vmatpush3.bf16.msra.mxu1 %v2808_v19  ;;  %2551 = vmatprep.subr.bf16.mxu0 %v2809_v20  ;;  %v2863_v60 = vld [vmem:[%s3005_s16 + $0xe4] ss:$8 sps:$4 sm:$0xff]   ;;  %v2865_v61 = vld [vmem:[%s3005_s16 + $0xe0] ss:$8 sps:$4 sm:$0xff]   ;;  %v2866_v62 = vld [vmem:[%s3005_s16 + $0xf4] ss:$8 sps:$4 sm:$0xff]  }
  0x26   : > { %2663 = vmatprep.subr.bf16.mxu1 %v2810_v21  ;;  %v2868_v63 = vld [vmem:[%s3005_s16 + $0xf0] ss:$8 sps:$4 sm:$0xff]   ;;  %v3044_v2 = vld [vmem:[%s3240_s3] ss:$0 sm:$0xff] }
  0x28   : > { %2552 = vmatpush3.bf16.msra.mxu0 %v2811_v22 }
  0x29   : > { %2664 = vmatpush3.bf16.msra.mxu1 %v2812_v23  ;;  %2553 = vmatprep.subr.bf16.mxu0 %v2813_v24 }
  0x2a   : > { %2665 = vmatprep.subr.bf16.mxu1 %v2814_v25 }
  0x2c   : > { %2554 = vmatpush3.bf16.msra.mxu0 %v2815_v26 }
  0x2d   : > { %2666 = vmatpush3.bf16.msra.mxu1 %v2816_v27  ;;  %2555 = vmatprep.subr.bf16.mxu0 %v2817_v28 }
  0x2e   : > { %2667 = vmatprep.subr.bf16.mxu1 %v2818_v29 }
  0x30   : > { %2556 = vmatpush3.bf16.msra.mxu0 %v2819_v30 }
  0x31   : > { %2668 = vmatpush3.bf16.msra.mxu1 %v2820_v31 }
  0x33   : > { %766 = vmatmul.mubr.bf16.vlgmr.msra.gmra.mrb[0].mxu0 %v2821_v32 }
  0x34   : > { %1055 = vmatmul.mubr.bf16.vlgmr.msra.gmra.mrb[0].mxu1 %v2821_v32  ;;  %773 = vmatprep.mubr.bf16.mxu0 %v2824_v34 }
  0x35   : > { %1062 = vmatprep.mubr.bf16.mxu1 %v2824_v34 }
  0x3b   : > { %774 = vmatmul.mubr.bf16.gmra.mrb[4].mxu0 %v2826_v35 }
  0x3c   : > { %1063 = vmatmul.mubr.bf16.gmra.mrb[4].mxu1 %v2826_v35  ;;  %781 = vmatprep.mubr.bf16.mxu0 %v2827_v36 }
  0x3d   : > { %1070 = vmatprep.mubr.bf16.mxu1 %v2827_v36 }
  0x43   : > { %782 = vmatmul.mubr.bf16.gmra.mrb[8].mxu0 %v2829_v37 }
  0x44   : > { %1071 = vmatmul.mubr.bf16.gmra.mrb[8].mxu1 %v2829_v37  ;;  %789 = vmatprep.mubr.bf16.mxu0 %v2830_v38 }
  0x45   : > { %1078 = vmatprep.mubr.bf16.mxu1 %v2830_v38 }
  0x4b   : > { %790 = vmatmul.mubr.bf16.gmra.mrb[12].mxu0 %v2832_v39 }
  0x4c   : > { %1079 = vmatmul.mubr.bf16.gmra.mrb[12].mxu1 %v2832_v39  ;;  %797 = vmatprep.mubr.bf16.mxu0 %v2833_v40 }
  0x4d   : > { %1086 = vmatprep.mubr.bf16.mxu1 %v2833_v40 }
  0x53   : > { %798 = vmatmul.mubr.bf16.gmra.mrb[16].mxu0 %v2835_v41 }
  0x54   : > { %1087 = vmatmul.mubr.bf16.gmra.mrb[16].mxu1 %v2835_v41  ;;  %805 = vmatprep.mubr.bf16.mxu0 %v2836_v42 }
  0x55   : > { %1094 = vmatprep.mubr.bf16.mxu1 %v2836_v42 }
  0x5b   : > { %806 = vmatmul.mubr.bf16.gmra.mrb[20].mxu0 %v2838_v43 }
  0x5c   : > { %1095 = vmatmul.mubr.bf16.gmra.mrb[20].mxu1 %v2838_v43  ;;  %813 = vmatprep.mubr.bf16.mxu0 %v2839_v44 }
  0x5d   : > { %1102 = vmatprep.mubr.bf16.mxu1 %v2839_v44 }
  0x63   : > { %814 = vmatmul.mubr.bf16.gmra.mrb[24].mxu0 %v2841_v45 }
  0x64   : > { %1103 = vmatmul.mubr.bf16.gmra.mrb[24].mxu1 %v2841_v45  ;;  %821 = vmatprep.mubr.bf16.mxu0 %v2842_v46 }
  0x65   : > { %1110 = vmatprep.mubr.bf16.mxu1 %v2842_v46 }
  0x6b   : > { %822 = vmatmul.mubr.bf16.gmra.mrb[28].mxu0 %v2844_v47 }
  0x6c   : > { %1111 = vmatmul.mubr.bf16.gmra.mrb[28].mxu1 %v2844_v47  ;;  %829 = vmatprep.mubr.bf16.mxu0 %v2845_v48 }
  0x6d   : > { %1118 = vmatprep.mubr.bf16.mxu1 %v2845_v48 }
  0x73   : > { %830 = vmatmul.mubr.bf16.gmra.mrb[32].mxu0 %v2847_v49 }
  0x74   : > { %1119 = vmatmul.mubr.bf16.gmra.mrb[32].mxu1 %v2847_v49  ;;  %837 = vmatprep.mubr.bf16.mxu0 %v2848_v50 }
  0x75   : > { %1126 = vmatprep.mubr.bf16.mxu1 %v2848_v50 }
  0x7b   : > { %838 = vmatmul.mubr.bf16.gmra.mrb[36].mxu0 %v2850_v51 }
  0x7c   : > { %1127 = vmatmul.mubr.bf16.gmra.mrb[36].mxu1 %v2850_v51  ;;  %845 = vmatprep.mubr.bf16.mxu0 %v2851_v52 }
  0x7d   : > { %1134 = vmatprep.mubr.bf16.mxu1 %v2851_v52 }
  0x83   : > { %846 = vmatmul.mubr.bf16.gmra.mrb[40].mxu0 %v2853_v53 }
  0x84   : > { %1135 = vmatmul.mubr.bf16.gmra.mrb[40].mxu1 %v2853_v53  ;;  %853 = vmatprep.mubr.bf16.mxu0 %v2854_v54 }
  0x85   : > { %1142 = vmatprep.mubr.bf16.mxu1 %v2854_v54 }
  0x8b   : > { %854 = vmatmul.mubr.bf16.gmra.mrb[44].mxu0 %v2856_v55 }
  0x8c   : > { %1143 = vmatmul.mubr.bf16.gmra.mrb[44].mxu1 %v2856_v55  ;;  %861 = vmatprep.mubr.bf16.mxu0 %v2857_v56 }
  0x8d   : > { %1150 = vmatprep.mubr.bf16.mxu1 %v2857_v56 }
  0x93   : > { %862 = vmatmul.mubr.bf16.gmra.mrb[48].mxu0 %v2859_v57 }
  0x94   : > { %1151 = vmatmul.mubr.bf16.gmra.mrb[48].mxu1 %v2859_v57  ;;  %869 = vmatprep.mubr.bf16.mxu0 %v2860_v58 }
  0x95   : > { %1158 = vmatprep.mubr.bf16.mxu1 %v2860_v58 }
  0x9b   : > { %870 = vmatmul.mubr.bf16.gmra.mrb[52].mxu0 %v2862_v59 }
  0x9c   : > { %1159 = vmatmul.mubr.bf16.gmra.mrb[52].mxu1 %v2862_v59  ;;  %877 = vmatprep.mubr.bf16.mxu0 %v2863_v60 }
  0x9d   : > { %1166 = vmatprep.mubr.bf16.mxu1 %v2863_v60 }
  0xa3   : > { %878 = vmatmul.mubr.bf16.gmra.mrb[56].mxu0 %v2865_v61 }
  0xa4   : > { %1167 = vmatmul.mubr.bf16.gmra.mrb[56].mxu1 %v2865_v61  ;;  %885 = vmatprep.mubr.bf16.mxu0 %v2866_v62 }
  0xa5   : > { %1174 = vmatprep.mubr.bf16.mxu1 %v2866_v62 }
  0xab   : > { %886 = vmatmul.mubr.bf16.gmra.mrb[60].mxu0 %v2868_v63 }
  0xac   : > { %1175 = vmatmul.mubr.bf16.gmra.mrb[60].mxu1 %v2868_v63 }
 0x106   : > { %v2557_v0 = vpop.f32.mrb[0].mxu0 }
 0x107   : > { %v2669_v1 = vpop.f32.mrb[0].mxu1  ;;  %v2558_v3 = vpop.f32.mrb[1].mxu0 }
 0x108   : > { %v2670_v4 = vpop.f32.mrb[1].mxu1  ;;  %v2559_v5 = vadd.f32 %v2558_v3, %v2557_v0  ;;  %v2560_v7 = vpop.f32.mrb[2].mxu0 }
 0x109   : > { %v2671_v6 = vadd.f32 %v2670_v4, %v2669_v1  ;;  %v2672_v8 = vpop.f32.mrb[2].mxu1  ;;  %v2561_v10 = vpop.f32.mrb[3].mxu0 }
 0x10a   : > { %v2673_v11 = vpop.f32.mrb[3].mxu1  ;;  %v768_v12 = vadd.f32 %v2559_v5, %v3044_v2  ;;  %v2562_v14 = vadd.f32 %v2561_v10, %v2560_v7 }
 0x10b   : > { %v1057_v13 = vadd.f32 %v2671_v6, %v3044_v2  ;;  %v2674_v15 = vadd.f32 %v2673_v11, %v2672_v8 }
 0x10c   : > { %vm1183_vm0 = vcmp.gt.f32.partialorder %v768_v12, 0.0  ;;  %v1216_v16 = vmul.f32 %v3046_v9, %v768_v12  ;;  %v771_v18 = vadd.f32 %v2562_v14, %v3044_v2 }
 0x10d   : > { %v1312_v17 = vmul.f32 %v3046_v9, %v1057_v13  ;;  %v1060_v19 = vadd.f32 %v2674_v15, %v3044_v2  ;;  %vm1280_vm1 = vcmp.gt.f32.partialorder %v1057_v13, 0.0 }
 0x10e   : > { %v1248_v20 = vsel %vm1183_vm0, %v768_v12, %v1216_v16  ;;  %v2563_v21 = vpop.f32.mrb[4].mxu0  ;;  %vm1184_vm2 = vcmp.gt.f32.partialorder %v771_v18, 0.0  ;;  %v1217_v24 = vmul.f32 %v3046_v9, %v771_v18 }
 0x10f   : > { %v2675_v22 = vpop.f32.mrb[4].mxu1  ;;  %v1922_v23 = vrot.slane %v1248_v20, 4  ;;  %vm1281_vm3 = vcmp.gt.f32.partialorder %v1060_v19, 0.0  ;;  %v2564_v25 = vpop.f32.mrb[5].mxu0  ;;  %v1313_v27 = vmul.f32 %v3046_v9, %v1060_v19  ;;  %v1344_v33 = vsel %vm1280_vm1, %v1057_v13, %v1312_v17 }
 0x110   : > { %v2676_v26 = vpop.f32.mrb[5].mxu1  ;;  %v2565_v28 = vadd.f32 %v2564_v25, %v2563_v21  ;;  %v2566_v30 = vpop.f32.mrb[6].mxu0  ;;  %v1249_v34 = vsel %vm1184_vm2, %v771_v18, %v1217_v24 }
 0x111   : > { %v2677_v29 = vadd.f32 %v2676_v26, %v2675_v22  ;;  %v2678_v31 = vpop.f32.mrb[6].mxu1  ;;  %v1923_v32 = vadd.f32 %v1922_v23, %v1248_v20  ;;  %v2567_v35 = vpop.f32.mrb[7].mxu0  ;;  %v2354_v37 = vpack.c.bf16 %v1249_v34, %v1248_v20  ;;  %v1345_v38 = vsel %vm1281_vm3, %v1060_v19, %v1313_v27 }
 0x112   : > { %v2679_v36 = vpop.f32.mrb[7].mxu1  ;;  %v776_v39 = vadd.f32 %v2565_v28, %v3044_v2  ;;  %v2434_v42 = vpack.c.bf16 %v1345_v38, %v1344_v33  ;;  %v2568_v43 = vadd.f32 %v2567_v35, %v2566_v30 }
 0x113   : > { %v1065_v40 = vadd.f32 %v2677_v29, %v3044_v2  ;;  %v1924_v41 = vrot.slane %v1923_v32, 2  ;;  %v2680_v44 = vadd.f32 %v2679_v36, %v2678_v31  ;;  %2355 = vst [vmem:[%s3060_s22] sm:$0xff] %v2354_v37  }
 0x114   : > { %v1218_v45 = vmul.f32 %v3046_v9, %v776_v39  ;;  %2435 = vst [vmem:[%s3066_s25] sm:$0xff] %v2434_v42   ;;  %v779_v48 = vadd.f32 %v2568_v43, %v3044_v2  ;;  %vm1185_vm4 = vcmp.gt.f32.partialorder %v776_v39, 0.0 }
 0x115   : > { %v1925_v46 = vadd.f32 %v1924_v41, %v1923_v32  ;;  %v1314_v47 = vmul.f32 %v3046_v9, %v1065_v40  ;;  %v1068_v49 = vadd.f32 %v2680_v44, %v3044_v2  ;;  %vm1282_vm5 = vcmp.gt.f32.partialorder %v1065_v40, 0.0 }
 0x116   : > { %v2569_v50 = vpop.f32.mrb[8].mxu0  ;;  %vm1186_vm6 = vcmp.gt.f32.partialorder %v779_v48, 0.0  ;;  %v1219_v53 = vmul.f32 %v3046_v9, %v779_v48  ;;  %v1250_v62 = vsel %vm1185_vm4, %v776_v39, %v1218_v45 }
 0x117   : > { %v2681_v51 = vpop.f32.mrb[8].mxu1  ;;  %v1926_v52 = vrot.slane %v1925_v46, 1  ;;  %vm1283_vm7 = vcmp.gt.f32.partialorder %v1068_v49, 0.0  ;;  %v2570_v54 = vpop.f32.mrb[9].mxu0  ;;  %v1315_v56 = vmul.f32 %v3046_v9, %v1068_v49  ;;  %v1346_v63 = vsel %vm1282_vm5, %v1065_v40, %v1314_v47 }
 0x118   : > { %v2682_v55 = vpop.f32.mrb[9].mxu1  ;;  %v2571_v57 = vadd.f32 %v2570_v54, %v2569_v50  ;;  %v2572_v59 = vpop.f32.mrb[10].mxu0  ;;  %v1251_v0 = vsel %vm1186_vm6, %v779_v48, %v1219_v53 }
 0x119   : > { %v2683_v58 = vadd.f32 %v2682_v55, %v2681_v51  ;;  %v2684_v60 = vpop.f32.mrb[10].mxu1  ;;  %v1927_v61 = vadd.f32 %v1926_v52, %v1925_v46  ;;  %v2573_v1 = vpop.f32.mrb[11].mxu0  ;;  %v2359_v4 = vpack.c.bf16 %v1251_v0, %v1250_v62  ;;  %v1347_v5 = vsel %vm1283_vm7, %v1068_v49, %v1315_v56 }
 0x11a   : > { %v2685_v3 = vpop.f32.mrb[11].mxu1  ;;  %v784_v6 = vadd.f32 %v2571_v57, %v3044_v2  ;;  %v2439_v10 = vpack.c.bf16 %v1347_v5, %v1346_v63  ;;  %v2574_v11 = vadd.f32 %v2573_v1, %v2572_v59 }
 0x11b   : > { %v1073_v7 = vadd.f32 %v2683_v58, %v3044_v2  ;;  %v1928_v8 = vmul.f32 0.125, %v1927_v61  ;;  %v2686_v12 = vadd.f32 %v2685_v3, %v2684_v60  ;;  %2511 = vst [vmem:[%s3060_s22 + $0x8] sm:$0xff] %v2359_v4  }
 0x11c   : > { %2526 = vst [vmem:[%s3066_s25 + $0x8] sm:$0xff] %v2439_v10   ;;  %v1220_v13 = vmul.f32 %v3046_v9, %v784_v6  ;;  %v787_v15 = vadd.f32 %v2574_v11, %v3044_v2  ;;  %vm1187_vm8 = vcmp.gt.f32.partialorder %v784_v6, 0.0 }
 0x11d   : > { %1929 = vst [vmem:[%s403_s8] sm:$0xff] %v1928_v8  ;;  %v1316_v14 = vmul.f32 %v3046_v9, %v1073_v7  ;;  %v1076_v16 = vadd.f32 %v2686_v12, %v3044_v2  ;;  %vm1284_vm9 = vcmp.gt.f32.partialorder %v1073_v7, 0.0 }
 0x11e   : > { %v2575_v17 = vpop.f32.mrb[12].mxu0  ;;  %vm1188_vm10 = vcmp.gt.f32.partialorder %v787_v15, 0.0  ;;  %v1221_v19 = vmul.f32 %v3046_v9, %v787_v15  ;;  %v1252_v27 = vsel %vm1187_vm8, %v784_v6, %v1220_v13 }
 0x11f   : > { %v2687_v18 = vpop.f32.mrb[12].mxu1  ;;  %vm1285_vm11 = vcmp.gt.f32.partialorder %v1076_v16, 0.0  ;;  %v1317_v20 = vmul.f32 %v3046_v9, %v1076_v16  ;;  %v2576_v21 = vpop.f32.mrb[13].mxu0  ;;  %v1348_v28 = vsel %vm1284_vm9, %v1073_v7, %v1316_v14 }
 0x120   : > { %v2688_v22 = vpop.f32.mrb[13].mxu1  ;;  %v2577_v23 = vadd.f32 %v2576_v21, %v2575_v17  ;;  %v2578_v25 = vpop.f32.mrb[14].mxu0  ;;  %v1253_v29 = vsel %vm1188_vm10, %v787_v15, %v1221_v19 }
 0x121   : > { %v2689_v24 = vadd.f32 %v2688_v22, %v2687_v18  ;;  %v2690_v26 = vpop.f32.mrb[14].mxu1  ;;  %v1349_v30 = vsel %vm1285_vm11, %v1076_v16, %v1317_v20  ;;  %v2579_v31 = vpop.f32.mrb[15].mxu0  ;;  %v2364_v33 = vpack.c.bf16 %v1253_v29, %v1252_v27 }
 0x122   : > { %v2691_v32 = vpop.f32.mrb[15].mxu1  ;;  %v2444_v34 = vpack.c.bf16 %v1349_v30, %v1348_v28  ;;  %v792_v35 = vadd.f32 %v2577_v23, %v3044_v2  ;;  %v2580_v37 = vadd.f32 %v2579_v31, %v2578_v25 }
 0x123   : > { %v1081_v36 = vadd.f32 %v2689_v24, %v3044_v2  ;;  %v2692_v38 = vadd.f32 %v2691_v32, %v2690_v26  ;;  %2512 = vst [vmem:[%s3060_s22 + $0x10] sm:$0xff] %v2364_v33  }
 0x124   : > { %2527 = vst [vmem:[%s3066_s25 + $0x10] sm:$0xff] %v2444_v34   ;;  %v1222_v39 = vmul.f32 %v3046_v9, %v792_v35  ;;  %v795_v41 = vadd.f32 %v2580_v37, %v3044_v2  ;;  %vm1189_vm12 = vcmp.gt.f32.partialorder %v792_v35, 0.0 }
 0x125   : > { %v1318_v40 = vmul.f32 %v3046_v9, %v1081_v36  ;;  %v1084_v42 = vadd.f32 %v2692_v38, %v3044_v2  ;;  %vm1286_vm13 = vcmp.gt.f32.partialorder %v1081_v36, 0.0 }
 0x126   : > { %v2581_v43 = vpop.f32.mrb[16].mxu0  ;;  %vm1190_vm14 = vcmp.gt.f32.partialorder %v795_v41, 0.0  ;;  %v1223_v45 = vmul.f32 %v3046_v9, %v795_v41  ;;  %v1254_v53 = vsel %vm1189_vm12, %v792_v35, %v1222_v39 }
 0x127   : > { %v2693_v44 = vpop.f32.mrb[16].mxu1  ;;  %vm1287_vm15 = vcmp.gt.f32.partialorder %v1084_v42, 0.0  ;;  %v1319_v46 = vmul.f32 %v3046_v9, %v1084_v42  ;;  %v2582_v47 = vpop.f32.mrb[17].mxu0  ;;  %v1350_v54 = vsel %vm1286_vm13, %v1081_v36, %v1318_v40 }
 0x128   : > { %v2694_v48 = vpop.f32.mrb[17].mxu1  ;;  %v2583_v49 = vadd.f32 %v2582_v47, %v2581_v43  ;;  %v2584_v51 = vpop.f32.mrb[18].mxu0  ;;  %v1255_v55 = vsel %vm1190_vm14, %v795_v41, %v1223_v45 }
 0x129   : > { %v2695_v50 = vadd.f32 %v2694_v48, %v2693_v44  ;;  %v2696_v52 = vpop.f32.mrb[18].mxu1  ;;  %v1351_v56 = vsel %vm1287_vm15, %v1084_v42, %v1319_v46  ;;  %v2585_v57 = vpop.f32.mrb[19].mxu0  ;;  %v2369_v59 = vpack.c.bf16 %v1255_v55, %v1254_v53 }
 0x12a   : > { %v2697_v58 = vpop.f32.mrb[19].mxu1  ;;  %v2449_v60 = vpack.c.bf16 %v1351_v56, %v1350_v54  ;;  %v800_v61 = vadd.f32 %v2583_v49, %v3044_v2  ;;  %v2586_v63 = vadd.f32 %v2585_v57, %v2584_v51 }
 0x12b   : > { %v1089_v62 = vadd.f32 %v2695_v50, %v3044_v2  ;;  %v2698_v0 = vadd.f32 %v2697_v58, %v2696_v52  ;;  %2513 = vst [vmem:[%s3060_s22 + $0x18] sm:$0xff] %v2369_v59  }
 0x12c   : > { %2528 = vst [vmem:[%s3066_s25 + $0x18] sm:$0xff] %v2449_v60   ;;  %v1224_v1 = vmul.f32 %v3046_v9, %v800_v61  ;;  %v803_v4 = vadd.f32 %v2586_v63, %v3044_v2  ;;  %vm1191_vm0 = vcmp.gt.f32.partialorder %v800_v61, 0.0 }
 0x12d   : > { %v1320_v3 = vmul.f32 %v3046_v9, %v1089_v62  ;;  %v1092_v5 = vadd.f32 %v2698_v0, %v3044_v2  ;;  %vm1288_vm1 = vcmp.gt.f32.partialorder %v1089_v62, 0.0 }
 0x12e   : > { %v2587_v6 = vpop.f32.mrb[20].mxu0  ;;  %vm1192_vm2 = vcmp.gt.f32.partialorder %v803_v4, 0.0  ;;  %v1225_v8 = vmul.f32 %v3046_v9, %v803_v4  ;;  %v1256_v17 = vsel %vm1191_vm0, %v800_v61, %v1224_v1 }
 0x12f   : > { %v2699_v7 = vpop.f32.mrb[20].mxu1  ;;  %vm1289_vm3 = vcmp.gt.f32.partialorder %v1092_v5, 0.0  ;;  %v1321_v10 = vmul.f32 %v3046_v9, %v1092_v5  ;;  %v2588_v11 = vpop.f32.mrb[21].mxu0  ;;  %v1352_v18 = vsel %vm1288_vm1, %v1089_v62, %v1320_v3 }
 0x130   : > { %v2700_v12 = vpop.f32.mrb[21].mxu1  ;;  %v2589_v13 = vadd.f32 %v2588_v11, %v2587_v6  ;;  %v2590_v15 = vpop.f32.mrb[22].mxu0  ;;  %v1257_v19 = vsel %vm1192_vm2, %v803_v4, %v1225_v8 }
 0x131   : > { %v2701_v14 = vadd.f32 %v2700_v12, %v2699_v7  ;;  %v2702_v16 = vpop.f32.mrb[22].mxu1  ;;  %v1353_v20 = vsel %vm1289_vm3, %v1092_v5, %v1321_v10  ;;  %v2591_v21 = vpop.f32.mrb[23].mxu0  ;;  %v2374_v23 = vpack.c.bf16 %v1257_v19, %v1256_v17 }
 0x132   : > { %v2703_v22 = vpop.f32.mrb[23].mxu1  ;;  %v2454_v24 = vpack.c.bf16 %v1353_v20, %v1352_v18  ;;  %v808_v25 = vadd.f32 %v2589_v13, %v3044_v2  ;;  %v2592_v27 = vadd.f32 %v2591_v21, %v2590_v15 }
 0x133   : > { %v1097_v26 = vadd.f32 %v2701_v14, %v3044_v2  ;;  %v2704_v28 = vadd.f32 %v2703_v22, %v2702_v16  ;;  %2514 = vst [vmem:[%s3060_s22 + $0x20] sm:$0xff] %v2374_v23  }
 0x134   : > { %2529 = vst [vmem:[%s3066_s25 + $0x20] sm:$0xff] %v2454_v24   ;;  %v1226_v29 = vmul.f32 %v3046_v9, %v808_v25  ;;  %v811_v31 = vadd.f32 %v2592_v27, %v3044_v2  ;;  %vm1193_vm4 = vcmp.gt.f32.partialorder %v808_v25, 0.0 }
 0x135   : > { %v1322_v30 = vmul.f32 %v3046_v9, %v1097_v26  ;;  %v1100_v32 = vadd.f32 %v2704_v28, %v3044_v2  ;;  %vm1290_vm5 = vcmp.gt.f32.partialorder %v1097_v26, 0.0 }
 0x136   : > { %v2593_v33 = vpop.f32.mrb[24].mxu0  ;;  %vm1194_vm6 = vcmp.gt.f32.partialorder %v811_v31, 0.0  ;;  %v1227_v35 = vmul.f32 %v3046_v9, %v811_v31  ;;  %v1258_v43 = vsel %vm1193_vm4, %v808_v25, %v1226_v29 }
 0x137   : > { %v2705_v34 = vpop.f32.mrb[24].mxu1  ;;  %vm1291_vm7 = vcmp.gt.f32.partialorder %v1100_v32, 0.0  ;;  %v1323_v36 = vmul.f32 %v3046_v9, %v1100_v32  ;;  %v2594_v37 = vpop.f32.mrb[25].mxu0  ;;  %v1354_v44 = vsel %vm1290_vm5, %v1097_v26, %v1322_v30 }
 0x138   : > { %v2706_v38 = vpop.f32.mrb[25].mxu1  ;;  %v2595_v39 = vadd.f32 %v2594_v37, %v2593_v33  ;;  %v2596_v41 = vpop.f32.mrb[26].mxu0  ;;  %v1259_v45 = vsel %vm1194_vm6, %v811_v31, %v1227_v35 }
 0x139   : > { %v2707_v40 = vadd.f32 %v2706_v38, %v2705_v34  ;;  %v2708_v42 = vpop.f32.mrb[26].mxu1  ;;  %v1355_v46 = vsel %vm1291_vm7, %v1100_v32, %v1323_v36  ;;  %v2597_v47 = vpop.f32.mrb[27].mxu0  ;;  %v2379_v49 = vpack.c.bf16 %v1259_v45, %v1258_v43 }
 0x13a   : > { %v2709_v48 = vpop.f32.mrb[27].mxu1  ;;  %v2459_v50 = vpack.c.bf16 %v1355_v46, %v1354_v44  ;;  %v816_v51 = vadd.f32 %v2595_v39, %v3044_v2  ;;  %v2598_v53 = vadd.f32 %v2597_v47, %v2596_v41 }
 0x13b   : > { %v1105_v52 = vadd.f32 %v2707_v40, %v3044_v2  ;;  %v2710_v54 = vadd.f32 %v2709_v48, %v2708_v42  ;;  %2515 = vst [vmem:[%s3060_s22 + $0x28] sm:$0xff] %v2379_v49  }
 0x13c   : > { %2530 = vst [vmem:[%s3066_s25 + $0x28] sm:$0xff] %v2459_v50   ;;  %v1228_v55 = vmul.f32 %v3046_v9, %v816_v51  ;;  %v819_v57 = vadd.f32 %v2598_v53, %v3044_v2  ;;  %vm1195_vm8 = vcmp.gt.f32.partialorder %v816_v51, 0.0 }
 0x13d   : > { %v1324_v56 = vmul.f32 %v3046_v9, %v1105_v52  ;;  %v1108_v58 = vadd.f32 %v2710_v54, %v3044_v2  ;;  %vm1292_vm9 = vcmp.gt.f32.partialorder %v1105_v52, 0.0 }
 0x13e   : > { %v2599_v59 = vpop.f32.mrb[28].mxu0  ;;  %vm1196_vm10 = vcmp.gt.f32.partialorder %v819_v57, 0.0  ;;  %v1229_v61 = vmul.f32 %v3046_v9, %v819_v57  ;;  %v1260_v6 = vsel %vm1195_vm8, %v816_v51, %v1228_v55 }
 0x13f   : > { %v2711_v60 = vpop.f32.mrb[28].mxu1  ;;  %vm1293_vm11 = vcmp.gt.f32.partialorder %v1108_v58, 0.0  ;;  %v1325_v62 = vmul.f32 %v3046_v9, %v1108_v58  ;;  %v2600_v63 = vpop.f32.mrb[29].mxu0  ;;  %v1356_v7 = vsel %vm1292_vm9, %v1105_v52, %v1324_v56 }
 0x140   : > { %v2712_v0 = vpop.f32.mrb[29].mxu1  ;;  %v2601_v1 = vadd.f32 %v2600_v63, %v2599_v59  ;;  %v2602_v4 = vpop.f32.mrb[30].mxu0  ;;  %v1261_v8 = vsel %vm1196_vm10, %v819_v57, %v1229_v61 }
 0x141   : > { %v2713_v3 = vadd.f32 %v2712_v0, %v2711_v60  ;;  %v2714_v5 = vpop.f32.mrb[30].mxu1  ;;  %v1357_v10 = vsel %vm1293_vm11, %v1108_v58, %v1325_v62  ;;  %v2603_v11 = vpop.f32.mrb[31].mxu0  ;;  %v2384_v13 = vpack.c.bf16 %v1261_v8, %v1260_v6 }
 0x142   : > { %v2715_v12 = vpop.f32.mrb[31].mxu1  ;;  %v2464_v14 = vpack.c.bf16 %v1357_v10, %v1356_v7  ;;  %v824_v15 = vadd.f32 %v2601_v1, %v3044_v2  ;;  %v2604_v17 = vadd.f32 %v2603_v11, %v2602_v4 }
 0x143   : > { %v1113_v16 = vadd.f32 %v2713_v3, %v3044_v2  ;;  %v2716_v18 = vadd.f32 %v2715_v12, %v2714_v5  ;;  %2516 = vst [vmem:[%s3060_s22 + $0x30] sm:$0xff] %v2384_v13  }
 0x144   : > { %2531 = vst [vmem:[%s3066_s25 + $0x30] sm:$0xff] %v2464_v14   ;;  %v1230_v19 = vmul.f32 %v3046_v9, %v824_v15  ;;  %v827_v21 = vadd.f32 %v2604_v17, %v3044_v2  ;;  %vm1197_vm12 = vcmp.gt.f32.partialorder %v824_v15, 0.0 }
 0x145   : > { %v1326_v20 = vmul.f32 %v3046_v9, %v1113_v16  ;;  %v1116_v22 = vadd.f32 %v2716_v18, %v3044_v2  ;;  %vm1294_vm13 = vcmp.gt.f32.partialorder %v1113_v16, 0.0 }
 0x146   : > { %v2605_v23 = vpop.f32.mrb[32].mxu0  ;;  %vm1198_vm14 = vcmp.gt.f32.partialorder %v827_v21, 0.0  ;;  %v1231_v25 = vmul.f32 %v3046_v9, %v827_v21  ;;  %v1262_v33 = vsel %vm1197_vm12, %v824_v15, %v1230_v19 }
 0x147   : > { %v2717_v24 = vpop.f32.mrb[32].mxu1  ;;  %vm1295_vm15 = vcmp.gt.f32.partialorder %v1116_v22, 0.0  ;;  %v1327_v26 = vmul.f32 %v3046_v9, %v1116_v22  ;;  %v2606_v27 = vpop.f32.mrb[33].mxu0  ;;  %v1358_v34 = vsel %vm1294_vm13, %v1113_v16, %v1326_v20 }
 0x148   : > { %v2718_v28 = vpop.f32.mrb[33].mxu1  ;;  %v2607_v29 = vadd.f32 %v2606_v27, %v2605_v23  ;;  %v2608_v31 = vpop.f32.mrb[34].mxu0  ;;  %v1263_v35 = vsel %vm1198_vm14, %v827_v21, %v1231_v25 }
 0x149   : > { %v2719_v30 = vadd.f32 %v2718_v28, %v2717_v24  ;;  %v2720_v32 = vpop.f32.mrb[34].mxu1  ;;  %v1359_v36 = vsel %vm1295_vm15, %v1116_v22, %v1327_v26  ;;  %v2609_v37 = vpop.f32.mrb[35].mxu0  ;;  %v2389_v39 = vpack.c.bf16 %v1263_v35, %v1262_v33 }
 0x14a   : > { %v2721_v38 = vpop.f32.mrb[35].mxu1  ;;  %v2469_v40 = vpack.c.bf16 %v1359_v36, %v1358_v34  ;;  %v832_v41 = vadd.f32 %v2607_v29, %v3044_v2  ;;  %v2610_v43 = vadd.f32 %v2609_v37, %v2608_v31 }
 0x14b   : > { %v1121_v42 = vadd.f32 %v2719_v30, %v3044_v2  ;;  %v2722_v44 = vadd.f32 %v2721_v38, %v2720_v32  ;;  %2517 = vst [vmem:[%s3060_s22 + $0x38] sm:$0xff] %v2389_v39  }
 0x14c   : > { %2532 = vst [vmem:[%s3066_s25 + $0x38] sm:$0xff] %v2469_v40   ;;  %v1232_v45 = vmul.f32 %v3046_v9, %v832_v41  ;;  %v835_v47 = vadd.f32 %v2610_v43, %v3044_v2  ;;  %vm1199_vm0 = vcmp.gt.f32.partialorder %v832_v41, 0.0 }
 0x14d   : > { %v1328_v46 = vmul.f32 %v3046_v9, %v1121_v42  ;;  %v1124_v48 = vadd.f32 %v2722_v44, %v3044_v2  ;;  %vm1296_vm1 = vcmp.gt.f32.partialorder %v1121_v42, 0.0 }
 0x14e   : > { %v2611_v49 = vpop.f32.mrb[36].mxu0  ;;  %vm1200_vm2 = vcmp.gt.f32.partialorder %v835_v47, 0.0  ;;  %v1233_v51 = vmul.f32 %v3046_v9, %v835_v47  ;;  %v1264_v59 = vsel %vm1199_vm0, %v832_v41, %v1232_v45 }
 0x14f   : > { %v2723_v50 = vpop.f32.mrb[36].mxu1  ;;  %vm1297_vm3 = vcmp.gt.f32.partialorder %v1124_v48, 0.0  ;;  %v1329_v52 = vmul.f32 %v3046_v9, %v1124_v48  ;;  %v2612_v53 = vpop.f32.mrb[37].mxu0  ;;  %v1360_v60 = vsel %vm1296_vm1, %v1121_v42, %v1328_v46 }
 0x150   : > { %v2724_v54 = vpop.f32.mrb[37].mxu1  ;;  %v2613_v55 = vadd.f32 %v2612_v53, %v2611_v49  ;;  %v2614_v57 = vpop.f32.mrb[38].mxu0  ;;  %v1265_v61 = vsel %vm1200_vm2, %v835_v47, %v1233_v51 }
 0x151   : > { %v2725_v56 = vadd.f32 %v2724_v54, %v2723_v50  ;;  %v2726_v58 = vpop.f32.mrb[38].mxu1  ;;  %v1361_v62 = vsel %vm1297_vm3, %v1124_v48, %v1329_v52  ;;  %v2615_v63 = vpop.f32.mrb[39].mxu0  ;;  %v2394_v1 = vpack.c.bf16 %v1265_v61, %v1264_v59 }
 0x152   : > { %v2727_v0 = vpop.f32.mrb[39].mxu1  ;;  %v2474_v3 = vpack.c.bf16 %v1361_v62, %v1360_v60  ;;  %v840_v4 = vadd.f32 %v2613_v55, %v3044_v2  ;;  %v2616_v6 = vadd.f32 %v2615_v63, %v2614_v57 }
 0x153   : > { %v1129_v5 = vadd.f32 %v2725_v56, %v3044_v2  ;;  %v2728_v7 = vadd.f32 %v2727_v0, %v2726_v58  ;;  %2518 = vst [vmem:[%s3060_s22 + $0x40] sm:$0xff] %v2394_v1  }
 0x154   : > { %2533 = vst [vmem:[%s3066_s25 + $0x40] sm:$0xff] %v2474_v3   ;;  %v1234_v8 = vmul.f32 %v3046_v9, %v840_v4  ;;  %v843_v11 = vadd.f32 %v2616_v6, %v3044_v2  ;;  %vm1201_vm4 = vcmp.gt.f32.partialorder %v840_v4, 0.0 }
 0x155   : > { %v1330_v10 = vmul.f32 %v3046_v9, %v1129_v5  ;;  %v1132_v12 = vadd.f32 %v2728_v7, %v3044_v2  ;;  %vm1298_vm5 = vcmp.gt.f32.partialorder %v1129_v5, 0.0 }
 0x156   : > { %v2617_v13 = vpop.f32.mrb[40].mxu0  ;;  %vm1202_vm6 = vcmp.gt.f32.partialorder %v843_v11, 0.0  ;;  %v1235_v15 = vmul.f32 %v3046_v9, %v843_v11  ;;  %v1266_v23 = vsel %vm1201_vm4, %v840_v4, %v1234_v8 }
 0x157   : > { %v2729_v14 = vpop.f32.mrb[40].mxu1  ;;  %vm1299_vm7 = vcmp.gt.f32.partialorder %v1132_v12, 0.0  ;;  %v1331_v16 = vmul.f32 %v3046_v9, %v1132_v12  ;;  %v2618_v17 = vpop.f32.mrb[41].mxu0  ;;  %v1362_v24 = vsel %vm1298_vm5, %v1129_v5, %v1330_v10 }
 0x158   : > { %v2730_v18 = vpop.f32.mrb[41].mxu1  ;;  %v2619_v19 = vadd.f32 %v2618_v17, %v2617_v13  ;;  %v2620_v21 = vpop.f32.mrb[42].mxu0  ;;  %v1267_v25 = vsel %vm1202_vm6, %v843_v11, %v1235_v15 }
 0x159   : > { %v2731_v20 = vadd.f32 %v2730_v18, %v2729_v14  ;;  %v2732_v22 = vpop.f32.mrb[42].mxu1  ;;  %v1363_v26 = vsel %vm1299_vm7, %v1132_v12, %v1331_v16  ;;  %v2621_v27 = vpop.f32.mrb[43].mxu0  ;;  %v2399_v29 = vpack.c.bf16 %v1267_v25, %v1266_v23 }
 0x15a   : > { %v2733_v28 = vpop.f32.mrb[43].mxu1  ;;  %v2479_v30 = vpack.c.bf16 %v1363_v26, %v1362_v24  ;;  %v848_v31 = vadd.f32 %v2619_v19, %v3044_v2  ;;  %v2622_v33 = vadd.f32 %v2621_v27, %v2620_v21 }
 0x15b   : > { %v1137_v32 = vadd.f32 %v2731_v20, %v3044_v2  ;;  %v2734_v34 = vadd.f32 %v2733_v28, %v2732_v22  ;;  %2519 = vst [vmem:[%s3060_s22 + $0x48] sm:$0xff] %v2399_v29  }
 0x15c   : > { %2534 = vst [vmem:[%s3066_s25 + $0x48] sm:$0xff] %v2479_v30   ;;  %v1236_v35 = vmul.f32 %v3046_v9, %v848_v31  ;;  %v851_v37 = vadd.f32 %v2622_v33, %v3044_v2  ;;  %vm1203_vm8 = vcmp.gt.f32.partialorder %v848_v31, 0.0 }
 0x15d   : > { %v1332_v36 = vmul.f32 %v3046_v9, %v1137_v32  ;;  %v1140_v38 = vadd.f32 %v2734_v34, %v3044_v2  ;;  %vm1300_vm9 = vcmp.gt.f32.partialorder %v1137_v32, 0.0 }
 0x15e   : > { %v2623_v39 = vpop.f32.mrb[44].mxu0  ;;  %vm1204_vm10 = vcmp.gt.f32.partialorder %v851_v37, 0.0  ;;  %v1237_v41 = vmul.f32 %v3046_v9, %v851_v37  ;;  %v1268_v49 = vsel %vm1203_vm8, %v848_v31, %v1236_v35 }
 0x15f   : > { %v2735_v40 = vpop.f32.mrb[44].mxu1  ;;  %vm1301_vm11 = vcmp.gt.f32.partialorder %v1140_v38, 0.0  ;;  %v1333_v42 = vmul.f32 %v3046_v9, %v1140_v38  ;;  %v2624_v43 = vpop.f32.mrb[45].mxu0  ;;  %v1364_v50 = vsel %vm1300_vm9, %v1137_v32, %v1332_v36 }
 0x160   : > { %v2736_v44 = vpop.f32.mrb[45].mxu1  ;;  %v2625_v45 = vadd.f32 %v2624_v43, %v2623_v39  ;;  %v2626_v47 = vpop.f32.mrb[46].mxu0  ;;  %v1269_v51 = vsel %vm1204_vm10, %v851_v37, %v1237_v41 }
 0x161   : > { %v2737_v46 = vadd.f32 %v2736_v44, %v2735_v40  ;;  %v2738_v48 = vpop.f32.mrb[46].mxu1  ;;  %v1365_v52 = vsel %vm1301_vm11, %v1140_v38, %v1333_v42  ;;  %v2627_v53 = vpop.f32.mrb[47].mxu0  ;;  %v2404_v55 = vpack.c.bf16 %v1269_v51, %v1268_v49 }
 0x162   : > { %v2739_v54 = vpop.f32.mrb[47].mxu1  ;;  %v2484_v56 = vpack.c.bf16 %v1365_v52, %v1364_v50  ;;  %v856_v57 = vadd.f32 %v2625_v45, %v3044_v2  ;;  %v2628_v59 = vadd.f32 %v2627_v53, %v2626_v47 }
 0x163   : > { %v1145_v58 = vadd.f32 %v2737_v46, %v3044_v2  ;;  %v2740_v60 = vadd.f32 %v2739_v54, %v2738_v48  ;;  %2520 = vst [vmem:[%s3060_s22 + $0x50] sm:$0xff] %v2404_v55  }
 0x164   : > { %2535 = vst [vmem:[%s3066_s25 + $0x50] sm:$0xff] %v2484_v56   ;;  %v1238_v61 = vmul.f32 %v3046_v9, %v856_v57  ;;  %v859_v63 = vadd.f32 %v2628_v59, %v3044_v2  ;;  %vm1205_vm12 = vcmp.gt.f32.partialorder %v856_v57, 0.0 }
 0x165   : > { %v1334_v62 = vmul.f32 %v3046_v9, %v1145_v58  ;;  %v1148_v0 = vadd.f32 %v2740_v60, %v3044_v2  ;;  %vm1302_vm13 = vcmp.gt.f32.partialorder %v1145_v58, 0.0 }
 0x166   : > { %v2629_v1 = vpop.f32.mrb[48].mxu0  ;;  %vm1206_vm14 = vcmp.gt.f32.partialorder %v859_v63, 0.0  ;;  %v1239_v4 = vmul.f32 %v3046_v9, %v859_v63  ;;  %v1270_v13 = vsel %vm1205_vm12, %v856_v57, %v1238_v61 }
 0x167   : > { %v2741_v3 = vpop.f32.mrb[48].mxu1  ;;  %vm1303_vm15 = vcmp.gt.f32.partialorder %v1148_v0, 0.0  ;;  %v1335_v5 = vmul.f32 %v3046_v9, %v1148_v0  ;;  %v2630_v6 = vpop.f32.mrb[49].mxu0  ;;  %v1366_v14 = vsel %vm1302_vm13, %v1145_v58, %v1334_v62 }
 0x168   : > { %v2742_v7 = vpop.f32.mrb[49].mxu1  ;;  %v2631_v8 = vadd.f32 %v2630_v6, %v2629_v1  ;;  %v2632_v11 = vpop.f32.mrb[50].mxu0  ;;  %v1271_v15 = vsel %vm1206_vm14, %v859_v63, %v1239_v4 }
 0x169   : > { %v2743_v10 = vadd.f32 %v2742_v7, %v2741_v3  ;;  %v2744_v12 = vpop.f32.mrb[50].mxu1  ;;  %v1367_v16 = vsel %vm1303_vm15, %v1148_v0, %v1335_v5  ;;  %v2633_v17 = vpop.f32.mrb[51].mxu0  ;;  %v2409_v19 = vpack.c.bf16 %v1271_v15, %v1270_v13 }
 0x16a   : > { %v2745_v18 = vpop.f32.mrb[51].mxu1  ;;  %v2489_v20 = vpack.c.bf16 %v1367_v16, %v1366_v14  ;;  %v864_v21 = vadd.f32 %v2631_v8, %v3044_v2  ;;  %v2634_v23 = vadd.f32 %v2633_v17, %v2632_v11 }
 0x16b   : > { %v1153_v22 = vadd.f32 %v2743_v10, %v3044_v2  ;;  %v2746_v24 = vadd.f32 %v2745_v18, %v2744_v12  ;;  %2521 = vst [vmem:[%s3060_s22 + $0x58] sm:$0xff] %v2409_v19  }
 0x16c   : > { %2536 = vst [vmem:[%s3066_s25 + $0x58] sm:$0xff] %v2489_v20   ;;  %v1240_v25 = vmul.f32 %v3046_v9, %v864_v21  ;;  %v867_v27 = vadd.f32 %v2634_v23, %v3044_v2  ;;  %vm1207_vm0 = vcmp.gt.f32.partialorder %v864_v21, 0.0 }
 0x16d   : > { %v1336_v26 = vmul.f32 %v3046_v9, %v1153_v22  ;;  %v1156_v28 = vadd.f32 %v2746_v24, %v3044_v2  ;;  %vm1304_vm1 = vcmp.gt.f32.partialorder %v1153_v22, 0.0 }
 0x16e   : > { %v2635_v29 = vpop.f32.mrb[52].mxu0  ;;  %vm1208_vm2 = vcmp.gt.f32.partialorder %v867_v27, 0.0  ;;  %v1241_v31 = vmul.f32 %v3046_v9, %v867_v27  ;;  %v1272_v39 = vsel %vm1207_vm0, %v864_v21, %v1240_v25 }
 0x16f   : > { %v2747_v30 = vpop.f32.mrb[52].mxu1  ;;  %vm1305_vm3 = vcmp.gt.f32.partialorder %v1156_v28, 0.0  ;;  %v1337_v32 = vmul.f32 %v3046_v9, %v1156_v28  ;;  %v2636_v33 = vpop.f32.mrb[53].mxu0  ;;  %v1368_v40 = vsel %vm1304_vm1, %v1153_v22, %v1336_v26 }
 0x170   : > { %v2748_v34 = vpop.f32.mrb[53].mxu1  ;;  %v2637_v35 = vadd.f32 %v2636_v33, %v2635_v29  ;;  %v2638_v37 = vpop.f32.mrb[54].mxu0  ;;  %v1273_v41 = vsel %vm1208_vm2, %v867_v27, %v1241_v31 }
 0x171   : > { %v2749_v36 = vadd.f32 %v2748_v34, %v2747_v30  ;;  %v2750_v38 = vpop.f32.mrb[54].mxu1  ;;  %v1369_v42 = vsel %vm1305_vm3, %v1156_v28, %v1337_v32  ;;  %v2639_v43 = vpop.f32.mrb[55].mxu0  ;;  %v2414_v45 = vpack.c.bf16 %v1273_v41, %v1272_v39 }
 0x172   : > { %v2751_v44 = vpop.f32.mrb[55].mxu1  ;;  %v2494_v46 = vpack.c.bf16 %v1369_v42, %v1368_v40  ;;  %v872_v47 = vadd.f32 %v2637_v35, %v3044_v2  ;;  %v2640_v49 = vadd.f32 %v2639_v43, %v2638_v37 }
 0x173   : > { %v1161_v48 = vadd.f32 %v2749_v36, %v3044_v2  ;;  %v2752_v50 = vadd.f32 %v2751_v44, %v2750_v38  ;;  %2522 = vst [vmem:[%s3060_s22 + $0x60] sm:$0xff] %v2414_v45  }
 0x174   : > { %2537 = vst [vmem:[%s3066_s25 + $0x60] sm:$0xff] %v2494_v46   ;;  %v1242_v51 = vmul.f32 %v3046_v9, %v872_v47  ;;  %v875_v53 = vadd.f32 %v2640_v49, %v3044_v2  ;;  %vm1209_vm4 = vcmp.gt.f32.partialorder %v872_v47, 0.0 }
 0x175   : > { %v1338_v52 = vmul.f32 %v3046_v9, %v1161_v48  ;;  %v1164_v54 = vadd.f32 %v2752_v50, %v3044_v2  ;;  %vm1306_vm5 = vcmp.gt.f32.partialorder %v1161_v48, 0.0 }
 0x176   : > { %v2641_v55 = vpop.f32.mrb[56].mxu0  ;;  %vm1210_vm6 = vcmp.gt.f32.partialorder %v875_v53, 0.0  ;;  %v1243_v57 = vmul.f32 %v3046_v9, %v875_v53  ;;  %v1274_v1 = vsel %vm1209_vm4, %v872_v47, %v1242_v51 }
 0x177   : > { %v2753_v56 = vpop.f32.mrb[56].mxu1  ;;  %vm1307_vm7 = vcmp.gt.f32.partialorder %v1164_v54, 0.0  ;;  %v1339_v58 = vmul.f32 %v3046_v9, %v1164_v54  ;;  %v2642_v59 = vpop.f32.mrb[57].mxu0  ;;  %v1370_v3 = vsel %vm1306_vm5, %v1161_v48, %v1338_v52 }
 0x178   : > { %v2754_v60 = vpop.f32.mrb[57].mxu1  ;;  %v2643_v61 = vadd.f32 %v2642_v59, %v2641_v55  ;;  %v2644_v63 = vpop.f32.mrb[58].mxu0  ;;  %v1275_v4 = vsel %vm1210_vm6, %v875_v53, %v1243_v57 }
 0x179   : > { %v2755_v62 = vadd.f32 %v2754_v60, %v2753_v56  ;;  %v2756_v0 = vpop.f32.mrb[58].mxu1  ;;  %v1371_v5 = vsel %vm1307_vm7, %v1164_v54, %v1339_v58  ;;  %v2645_v6 = vpop.f32.mrb[59].mxu0  ;;  %v2419_v8 = vpack.c.bf16 %v1275_v4, %v1274_v1 }
 0x17a   : > { %v2757_v7 = vpop.f32.mrb[59].mxu1  ;;  %v2499_v10 = vpack.c.bf16 %v1371_v5, %v1370_v3  ;;  %v880_v11 = vadd.f32 %v2643_v61, %v3044_v2  ;;  %v2646_v13 = vadd.f32 %v2645_v6, %v2644_v63 }
 0x17b   : > { %v1169_v12 = vadd.f32 %v2755_v62, %v3044_v2  ;;  %v2758_v14 = vadd.f32 %v2757_v7, %v2756_v0  ;;  %2523 = vst [vmem:[%s3060_s22 + $0x68] sm:$0xff] %v2419_v8  }
 0x17c   : > { %2538 = vst [vmem:[%s3066_s25 + $0x68] sm:$0xff] %v2499_v10   ;;  %v1244_v15 = vmul.f32 %v3046_v9, %v880_v11  ;;  %v883_v17 = vadd.f32 %v2646_v13, %v3044_v2  ;;  %vm1211_vm8 = vcmp.gt.f32.partialorder %v880_v11, 0.0 }
 0x17d   : > { %v1340_v16 = vmul.f32 %v3046_v9, %v1169_v12  ;;  %v1172_v18 = vadd.f32 %v2758_v14, %v3044_v2  ;;  %vm1308_vm9 = vcmp.gt.f32.partialorder %v1169_v12, 0.0 }
 0x17e   : > { %v2647_v19 = vpop.f32.mrb[60].mxu0  ;;  %vm1212_vm10 = vcmp.gt.f32.partialorder %v883_v17, 0.0  ;;  %v1245_v21 = vmul.f32 %v3046_v9, %v883_v17  ;;  %v1276_v29 = vsel %vm1211_vm8, %v880_v11, %v1244_v15 }
 0x17f   : > { %v2759_v20 = vpop.f32.mrb[60].mxu1  ;;  %vm1309_vm11 = vcmp.gt.f32.partialorder %v1172_v18, 0.0  ;;  %v1341_v22 = vmul.f32 %v3046_v9, %v1172_v18  ;;  %v2648_v23 = vpop.f32.mrb[61].mxu0  ;;  %v1372_v30 = vsel %vm1308_vm9, %v1169_v12, %v1340_v16 }
 0x180   : > { %v2760_v24 = vpop.f32.mrb[61].mxu1  ;;  %v2649_v25 = vadd.f32 %v2648_v23, %v2647_v19  ;;  %v2650_v27 = vpop.f32.mrb[62].mxu0  ;;  %v1277_v31 = vsel %vm1212_vm10, %v883_v17, %v1245_v21 }
 0x181   : > { %v2761_v26 = vadd.f32 %v2760_v24, %v2759_v20  ;;  %v2762_v28 = vpop.f32.mrb[62].mxu1  ;;  %v1373_v32 = vsel %vm1309_vm11, %v1172_v18, %v1341_v22  ;;  %v2651_v33 = vpop.f32.mrb[63].mxu0  ;;  %v2424_v35 = vpack.c.bf16 %v1277_v31, %v1276_v29 }
 0x182   : > { %v2763_v34 = vpop.f32.mrb[63].mxu1  ;;  %v2504_v36 = vpack.c.bf16 %v1373_v32, %v1372_v30  ;;  %v888_v37 = vadd.f32 %v2649_v25, %v3044_v2  ;;  %v2652_v39 = vadd.f32 %v2651_v33, %v2650_v27 }
 0x183   : > { %v1177_v38 = vadd.f32 %v2761_v26, %v3044_v2  ;;  %v2764_v40 = vadd.f32 %v2763_v34, %v2762_v28  ;;  %2524 = vst [vmem:[%s3060_s22 + $0x70] sm:$0xff] %v2424_v35  }
 0x184   : > { %2539 = vst [vmem:[%s3066_s25 + $0x70] sm:$0xff] %v2504_v36   ;;  %v1246_v41 = vmul.f32 %v3046_v9, %v888_v37  ;;  %v891_v43 = vadd.f32 %v2652_v39, %v3044_v2  ;;  %vm1213_vm12 = vcmp.gt.f32.partialorder %v888_v37, 0.0 }
 0x185   : > { %v1342_v42 = vmul.f32 %v3046_v9, %v1177_v38  ;;  %v1180_v44 = vadd.f32 %v2764_v40, %v3044_v2  ;;  %vm1310_vm13 = vcmp.gt.f32.partialorder %v1177_v38, 0.0 }
 0x186   : > { %vm1214_vm14 = vcmp.gt.f32.partialorder %v891_v43, 0.0  ;;  %v1247_v45 = vmul.f32 %v3046_v9, %v891_v43  ;;  %v1278_v47 = vsel %vm1213_vm12, %v888_v37, %v1246_v41 }
 0x187   : > { %vm1311_vm15 = vcmp.gt.f32.partialorder %v1180_v44, 0.0  ;;  %v1343_v46 = vmul.f32 %v3046_v9, %v1180_v44  ;;  %v1374_v48 = vsel %vm1310_vm13, %v1177_v38, %v1342_v42 }
 0x188   : > { %v1279_v49 = vsel %vm1214_vm14, %v891_v43, %v1247_v45 }
 0x189   : > { %v1375_v50 = vsel %vm1311_vm15, %v1180_v44, %v1343_v46  ;;  %v2429_v51 = vpack.c.bf16 %v1279_v49, %v1278_v47 }
 0x18a   : > { %v2509_v52 = vpack.c.bf16 %v1375_v50, %v1374_v48 }
 0x18b   : > { %2525 = vst [vmem:[%s3060_s22 + $0x78] sm:$0xff] %v2429_v51  }
 0x18c   : > { %2540 = vst [vmem:[%s3066_s25 + $0x78] sm:$0xff] %v2509_v52  }
 0x18d PF: > { %s19_s28 = sadd.s32 1, %s2891_s28   ;;  %s3245_s26 = smov %s2887_s27 }
 0x18e   : > { %p16_p5 = scmp.ge.s32.totalorder %s19_s28, 4   ;;  %s3246_s27 = smov %s3248_s4 }
 0x190   :  { %18 = sbr.rel (!%p16_p5) target bundleno = 2 (0x2), region = 100 }

</bundles_post_ra>
